<compile_context>
chip_gen: v5e
topology: v5e:2x2
jax: 0.10.0
libtpu: 0.0.40
codegen_flags: <defaults>
</compile_context>

<pallas_src>
from functools import partial

import jax
import jax.numpy as jnp
from jax.experimental import pallas as pl
from jax.experimental.pallas import tpu as pltpu


# ----------------------------------------------------------------------------
# small helpers
# ----------------------------------------------------------------------------
def _cdiv(a, b):
    return -(-a // b)


def _round_up(x, m):
    return _cdiv(x, m) * m


def _next_pow2(x):
    p = 1
    while p < x:
        p *= 2
    return p


def _pool_geometry(t_out, k):
    """Pick the pooled layout.

    Fast path (k divides 128): pad the number of conv positions so t_pad*k is a
    multiple of 128 -> aligned 128-lane column groups + in-vreg roll reduction,
    and a lane-dense 128-wide output store.  Otherwise fall back to the generic
    k-wide slice-max loop.
    """
    if 128 % k == 0:
        group = 128 // k
        return _round_up(t_out, group), 128
    return t_out, k


# ----------------------------------------------------------------------------
# weight preparation (done ONCE outside the per-call forward path and cached)
# ----------------------------------------------------------------------------
def build_toeplitz_weight(conv_w, char_len, t_pad):
    """conv_w (fs, D, K) -> block-Toeplitz matrix (char_len*D, t_pad*K).

    (emb_flat @ W)[:, t*K:(t+1)*K] == sum_f emb[:, t+f, :] @ conv_w[f].
    Padded t-blocks (t >= t_out) duplicate block t=0 so they never change the
    subsequent max-pool.
    """
    fs, d, k = conv_w.shape
    t_out = char_len - fs + 1
    w_flat = conv_w.reshape(fs * d, k)
    w = jnp.zeros((char_len * d, t_pad * k), conv_w.dtype)
    for t in range(t_out):
        w = w.at[t * d:(t + fs) * d, t * k:(t + 1) * k].set(w_flat)
    for t in range(t_out, t_pad):            # max-pool-neutral duplicates of t=0
        w = w.at[0:fs * d, t * k:(t + 1) * k].set(w_flat)
    return w


def build_folded_weight(char_ebd, conv_w, char_len, v_pad, t_pad):
    """Fold the embedding table into the Toeplitz conv weight.

    W[c*V + v, t*K + k] = (char_ebd @ conv_w[c-t])[v, k]  for 0 <= c-t < fs,
    so onehot(ids) @ W equals the per-position conv outputs (no bias).
    Padded t-blocks duplicate block t=0 (max-pool neutral).
    """
    fs, d, k = conv_w.shape
    t_out = char_len - fs + 1
    vocab = char_ebd.shape[0]
    e = jnp.zeros((v_pad, d), char_ebd.dtype).at[:vocab, :].set(char_ebd)
    folded = jnp.einsum("vd,fdk->fvk", e, conv_w)            # (fs, V, K)
    w = jnp.zeros((char_len * v_pad, t_pad * k), conv_w.dtype)
    for t in range(t_out):
        for f in range(fs):
            c = t + f
            w = w.at[c * v_pad:(c + 1) * v_pad, t * k:(t + 1) * k].set(folded[f])
    for t in range(t_out, t_pad):
        for f in range(fs):
            w = w.at[f * v_pad:(f + 1) * v_pad, t * k:(t + 1) * k].set(folded[f])
    return w


# ----------------------------------------------------------------------------
# kernels
# ----------------------------------------------------------------------------
def _pool_bias_relu(pre, bias, k, pool_width):
    """pre (tile_n, t_pad*k) f32 -> max over conv positions, + bias, ReLU."""
    if pool_width == 128:
        # Aligned full-vreg VPU maxima over the 128-lane column groups ...
        groups = pre.shape[1] // 128
        res = pre[:, 0:128]
        for g in range(1, groups):
            res = jnp.maximum(res, pre[:, g * 128:(g + 1) * 128])
        # ... then reduce the 128//k sub-blocks inside the vreg on the XLU.
        shift = 64
        while shift >= k:
            res = jnp.maximum(res, pltpu.roll(res, shift, 1))
            shift //= 2
        # Result is replicated every k lanes -> store the full 128-wide slab
        # (unmasked lane-dense vst); the wrapper slices [:, :k].
    else:
        # Generic fallback when k does not divide 128.
        t_pad = pre.shape[1] // k
        res = pre[:, 0:k]
        for t in range(1, t_pad):
            res = jnp.maximum(res, pre[:, t * k:(t + 1) * k])
    return jnp.maximum(res + bias, 0.0)


def _fused_kernel(ids_ref, expand_ref, w_ref, b_ref, out_ref, *,
                  v_pad, k, pool_width):
    """Fused embedding-gather + conv (Toeplitz matmul) + max-pool + bias + ReLU.

    ids_ref:    (tile_n, char_len)            int32 char ids
    expand_ref: (char_len, char_len*V)        f32, expand[c, c*V:(c+1)*V] = 1
    w_ref:      (char_len*V, t_pad*K)         bf16/f32 embedding-folded Toeplitz
    b_ref:      (1, pool_width)               f32 (bias tiled across sub-blocks)
    out_ref:    (tile_n, pool_width)          f32
    """
    # Expand ids so lane j of ids_exp holds ids[:, j // V] (tiny MXU matmul of
    # exact small integers; avoids any in-kernel reshape/relayout).
    ids = ids_ref[...].astype(jnp.float32)
    ids_exp = jnp.dot(ids, expand_ref[...],
                      preferred_element_type=jnp.float32)          # (tile_n, C*V)
    # One-hot(ids) built from a broadcasted iota (v_pad is a power of two).
    lane_v = jax.lax.broadcasted_iota(jnp.int32, ids_exp.shape, 1) & (v_pad - 1)
    onehot = jnp.where(ids_exp == lane_v.astype(jnp.float32),
                       1.0, 0.0).astype(w_ref.dtype)
    # Gather + conv collapsed into one lane-dense MXU matmul (f32 accumulate).
    pre = jnp.dot(onehot, w_ref[...], preferred_element_type=jnp.float32)
    out_ref[...] = _pool_bias_relu(pre, b_ref[...], k, pool_width
                                   ).astype(out_ref.dtype)


def _emb_kernel(emb_ref, w_ref, b_ref, out_ref, *, k, pool_width):
    """Non-fused path: embedding rows streamed from HBM (gather done in XLA)."""
    pre = jnp.dot(emb_ref[...], w_ref[...], preferred_element_type=jnp.float32)
    out_ref[...] = _pool_bias_relu(pre, b_ref[...], k, pool_width
                                   ).astype(out_ref.dtype)


# ----------------------------------------------------------------------------
# pallas_call wrappers
# ----------------------------------------------------------------------------
def _choose_tiles(n, max_tile_n, row_align=16, min_rows_for_split=512):
    """Pad n only to the sublane multiple (not a full tile) and split near-
    evenly; force >=2 grid steps when there is enough work so both v7x
    TensorCores run the "parallel" grid axis."""
    n_al = _round_up(max(n, row_align), row_align)
    steps = _cdiv(n_al, max_tile_n)
    if steps == 1 and n_al >= min_rows_for_split:
        steps = 2
    tile_n = _round_up(_cdiv(n_al, steps), row_align)
    return tile_n, tile_n * steps, steps


def _run_pallas(kernel, inputs, in_specs, n_pad, steps, tile_n, pool_width):
    # NOTE: the constant-index blocks (weight / expand / bias) could use
    # pipeline_mode=pl.Buffered(1) to drop their second VMEM buffer; left at
    # the default for maximum lowering robustness (they are <= ~1 MiB).
    return pl.pallas_call(
        kernel,
        out_shape=jax.ShapeDtypeStruct((n_pad, pool_width), jnp.float32),
        grid_spec=pltpu.PrefetchScalarGridSpec(
            num_scalar_prefetch=0,
            grid=(steps,),
            in_specs=in_specs,
            out_specs=pl.BlockSpec((tile_n, pool_width), lambda i: (i, 0)),
        ),
        compiler_params=pltpu.CompilerParams(
            dimension_semantics=("parallel",),
            vmem_limit_bytes=40 * 1024 * 1024,
        ),
    )(*inputs)


# ----------------------------------------------------------------------------
# public API
# ----------------------------------------------------------------------------
def make_cnn_consts(params, char_len, *, fuse_gather=True,
                    compute_dtype=jnp.bfloat16):
    """Precompute per-(char_len) device constants ONCE; reuse across calls."""
    fs = int(params["filter_size"])
    assert char_len >= fs, "char_len must be >= filter_size"
    d = params["char_ebd"].shape[1]
    k = params["conv_b"].shape[-1]
    t_out = char_len - fs + 1
    t_pad, pool_width = _pool_geometry(t_out, k)
    bias = params["conv_b"].reshape(1, k).astype(jnp.float32)
    bias = jnp.tile(bias, (1, pool_width // k))
    consts = {
        "char_len": char_len, "k": k, "d": d, "t_pad": t_pad,
        "pool_width": pool_width, "fuse_gather": fuse_gather, "bias": bias,
    }
    if fuse_gather:
        v_pad = max(_next_pow2(params["char_ebd"].shape[0]), 8)
        consts["v_pad"] = v_pad
        consts["expand"] = jnp.repeat(
            jnp.eye(char_len, dtype=jnp.float32), v_pad, axis=1)
        consts["w"] = build_folded_weight(
            params["char_ebd"], params["conv_w"], char_len, v_pad, t_pad
        ).astype(compute_dtype)
    else:
        consts["w"] = build_toeplitz_weight(
            params["conv_w"], char_len, t_pad).astype(compute_dtype)
        consts["emb_tbl"] = params["char_ebd"].astype(compute_dtype)
    return consts


def cnn_forward(params, x, *, consts=None, fuse_gather=True,
                compute_dtype=jnp.bfloat16, max_tile_n=1024):
    """CNN.forward: x (bsz, word_len, char_len) int -> (bsz, word_len, K) f32.

    Dropout is treated as identity (inference semantics).
    # TODO(synk): PyTorch's F.dropout(training=True) randomly zeros + rescales;
    # a stochastic variant would need pltpu.prng_* and a seed argument.
    """
    bsz, word_len, char_len = x.shape
    if consts is None:
        consts = make_cnn_consts(params, char_len, fuse_gather=fuse_gather,
                                 compute_dtype=compute_dtype)
    assert consts["char_len"] == char_len
    k, pool_width, t_pad = consts["k"], consts["pool_width"], consts["t_pad"]

    n = bsz * word_len
    tile_n, n_pad, steps = _choose_tiles(n, max_tile_n)

    if consts["fuse_gather"]:
        v_pad = consts["v_pad"]
        ids = x.reshape(n, char_len).astype(jnp.int32)
        if n_pad != n:
            ids = jnp.pad(ids, ((0, n_pad - n), (0, 0)))
        in_specs = [
            pl.BlockSpec((tile_n, char_len), lambda i: (i, 0)),
            pl.BlockSpec((char_len, char_len * v_pad), lambda i: (0, 0)),
            pl.BlockSpec((char_len * v_pad, t_pad * k), lambda i: (0, 0)),
            pl.BlockSpec((1, pool_width), lambda i: (0, 0)),
        ]
        kernel = partial(_fused_kernel, v_pad=v_pad, k=k, pool_width=pool_width)
        out = _run_pallas(kernel,
                          (ids, consts["expand"], consts["w"], consts["bias"]),
                          in_specs, n_pad, steps, tile_n, pool_width)
    else:
        d = consts["d"]
        emb = consts["emb_tbl"][x.reshape(n, char_len)].reshape(n, char_len * d)
        if n_pad != n:
            emb = jnp.pad(emb, ((0, n_pad - n), (0, 0)))
        in_specs = [
            pl.BlockSpec((tile_n, char_len * d), lambda i: (i, 0)),
            pl.BlockSpec((char_len * d, t_pad * k), lambda i: (0, 0)),
            pl.BlockSpec((1, pool_width), lambda i: (0, 0)),
        ]
        kernel = partial(_emb_kernel, k=k, pool_width=pool_width)
        out = _run_pallas(kernel, (emb, consts["w"], consts["bias"]),
                          in_specs, n_pad, steps, tile_n, pool_width)

    return out[:n, :k].reshape(bsz, word_len, k)


# ----------------------------------------------------------------------------
# parameter init (mirrors the PyTorch module) and a plain-JAX reference
# ----------------------------------------------------------------------------
def init_params(key, char_size, char_ebd_dim, kernel_num, filter_size):
    k_ebd, k_w, k_b = jax.random.split(key, 3)
    # Xavier-uniform embedding (as in _init_weight).
    bound_e = (6.0 / (char_size + char_ebd_dim)) ** 0.5
    char_ebd = jax.random.uniform(
        k_ebd, (char_size, char_ebd_dim), jnp.float32, -bound_e, bound_e)
    # Conv2d default init: fan_in = 1 * filter_size * D.
    fan_in = filter_size * char_ebd_dim
    bound_w = (1.0 / fan_in) ** 0.5
    conv_w_torch = jax.random.uniform(
        k_w, (kernel_num, 1, filter_size, char_ebd_dim), jnp.float32,
        -bound_w, bound_w)
    conv_b = jax.random.uniform(
        k_b, (kernel_num,), jnp.float32, -bound_w, bound_w)
    conv_w = jnp.transpose(conv_w_torch[:, 0, :, :], (1, 2, 0))  # (fs, D, K)
    return {
        "char_ebd": char_ebd,
        "conv_w": conv_w,
        "conv_b": conv_b.reshape(1, kernel_num),
        "filter_size": filter_size,
    }


def reference_forward(params, x):
    """Plain-JAX reference of the same forward pass for validation."""
    bsz, word_len, char_len = x.shape
    emb = params["char_ebd"][x.reshape(-1, char_len)]        # (N, L, D)
    fs = params["filter_size"]
    w, b = params["conv_w"], params["conv_b"]                # (fs, D, K), (1, K)
    t_out = char_len - fs + 1
    convs = []
    for t in range(t_out):
        acc = b
        for f in range(fs):
            acc = acc + emb[:, t + f, :] @ w[f]
        convs.append(jnp.maximum(acc, 0.0))
    out = jnp.max(jnp.stack(convs, axis=1), axis=1)          # max over positions
    return out.reshape(bsz, word_len, -1)


if __name__ == "__main__":
    char_size, char_ebd_dim = 50, 16
    kernel_num, filter_size, dropout = 32, 3, 0.5

    key = jax.random.PRNGKey(0)
    k_params, k_in1, k_in2 = jax.random.split(key, 3)
    params = init_params(k_params, char_size, char_ebd_dim, kernel_num,
                         filter_size)

    x1 = jax.random.randint(k_in1, (2, 8, 16), 0, char_size, dtype=jnp.int32)
    x2 = jax.random.randint(k_in2, (3, 5, 16), 0, char_size, dtype=jnp.int32)
    ref1 = jax.block_until_ready(reference_forward(params, x1))
    ref2 = jax.block_until_ready(reference_forward(params, x2))

    # Fused in-kernel gather, f32 operands: tight check of the kernel logic.
    c_fused_f32 = make_cnn_consts(params, 16, fuse_gather=True,
                                  compute_dtype=jnp.float32)
    out1 = jax.block_until_ready(cnn_forward(params, x1, consts=c_fused_f32))
    out2 = jax.block_until_ready(cnn_forward(params, x2, consts=c_fused_f32))
    assert out1.shape == (2, 8, kernel_num), out1.shape
    assert out2.shape == (3, 5, kernel_num), out2.shape
    assert jnp.allclose(out1, ref1, atol=1e-5, rtol=1e-5)
    assert jnp.allclose(out2, ref2, atol=1e-5, rtol=1e-5)   # pad/tail path

    # Non-fused (streamed-embedding) path, f32: alternative for v5e large-N.
    c_emb_f32 = make_cnn_consts(params, 16, fuse_gather=False,
                                compute_dtype=jnp.float32)
    out3 = jax.block_until_ready(cnn_forward(params, x1, consts=c_emb_f32))
    assert jnp.allclose(out3, ref1, atol=1e-5, rtol=1e-5)

    # Default path: fused gather + bf16 operands (f32 accumulation).
    out_bf16 = jax.block_until_ready(cnn_forward(params, x1))
    assert jnp.max(jnp.abs(out_bf16 - ref1)) < 5e-2

    print("KERNEL_OK")
</pallas_src>

<mosaic_0001>
module attributes {stable_mosaic.version = 11 : i64} {
  func.func @_fused_kernel(%arg0: i32, %arg1: memref<16x16xi32, #tpu.memory_space<vmem>>, %arg2: memref<16x1024xf32, #tpu.memory_space<vmem>>, %arg3: memref<1024x512xf32, #tpu.memory_space<vmem>>, %arg4: memref<1x128xf32, #tpu.memory_space<vmem>>, %arg5: memref<16x128xf32, #tpu.memory_space<vmem>>) attributes {dimension_semantics = [#tpu.dimension_semantics<parallel>], iteration_bounds = array<i64: 1>, scalar_prefetch = 0 : i64, scratch_operands = 0 : i64, tpu.core_type = #tpu.core_type<tc>, window_params = [{transform_indices = @transform_0, window_bounds = array<i64: 16, 16>}, {pipeline_mode = #tpu.pipeline_mode<synchronous>, transform_indices = @transform_1, window_bounds = array<i64: 16, 1024>}, {pipeline_mode = #tpu.pipeline_mode<synchronous>, transform_indices = @transform_2, window_bounds = array<i64: 1024, 512>}, {pipeline_mode = #tpu.pipeline_mode<synchronous>, transform_indices = @transform_3, window_bounds = array<i64: 1, 128>}, {transform_indices = @transform_4, window_bounds = array<i64: 16, 128>}]} {
    %c0 = arith.constant 0 : index
    %c0_0 = arith.constant 0 : index
    %0 = vector.load %arg1[%c0, %c0_0] : memref<16x16xi32, #tpu.memory_space<vmem>>, vector<16x16xi32>
    %1 = arith.sitofp %0 : vector<16x16xi32> to vector<16x16xf32>
    %c0_1 = arith.constant 0 : index
    %c0_2 = arith.constant 0 : index
    %2 = vector.load %arg2[%c0_1, %c0_2] : memref<16x1024xf32, #tpu.memory_space<vmem>>, vector<16x1024xf32>
    %cst = arith.constant dense<0.000000e+00> : vector<16x1024xf32>
    %3 = tpu.matmul %1, %2, %cst {dimension_numbers = #tpu.dot_dimension_numbers<[1], [0], [0], [1], [0, 0, 1, 1], [], []>} : vector<16x16xf32>, vector<16x1024xf32>, vector<16x1024xf32> -> vector<16x1024xf32>
    %4 = tpu.iota {dimensions = array<i32: 1>} : vector<16x1024xi32>
    %c63_i32 = arith.constant 63 : i32
    %5 = vector.broadcast %c63_i32 : i32 to vector<16x1024xi32>
    %6 = arith.andi %4, %5 : vector<16x1024xi32>
    %7 = arith.sitofp %6 : vector<16x1024xi32> to vector<16x1024xf32>
    %8 = arith.cmpf oeq, %3, %7 : vector<16x1024xf32>
    %cst_3 = arith.constant 1.000000e+00 : f32
    %cst_4 = arith.constant 0.000000e+00 : f32
    %9 = vector.broadcast %cst_3 : f32 to vector<16x1024xf32>
    %10 = vector.broadcast %cst_4 : f32 to vector<16x1024xf32>
    %11 = arith.select %8, %9, %10 : vector<16x1024xi1>, vector<16x1024xf32>
    %c0_5 = arith.constant 0 : index
    %c0_6 = arith.constant 0 : index
    %12 = vector.load %arg3[%c0_5, %c0_6] : memref<1024x512xf32, #tpu.memory_space<vmem>>, vector<1024x512xf32>
    %cst_7 = arith.constant dense<0.000000e+00> : vector<16x512xf32>
    %13 = tpu.matmul %11, %12, %cst_7 {dimension_numbers = #tpu.dot_dimension_numbers<[1], [0], [0], [1], [0, 0, 1, 1], [], []>} : vector<16x1024xf32>, vector<1024x512xf32>, vector<16x512xf32> -> vector<16x512xf32>
    %c0_8 = arith.constant 0 : index
    %c0_9 = arith.constant 0 : index
    %14 = vector.load %arg4[%c0_8, %c0_9] : memref<1x128xf32, #tpu.memory_space<vmem>>, vector<1x128xf32>
    %15 = vector.extract_strided_slice %13 {offsets = [0, 0], sizes = [16, 128], strides = [1, 1]} : vector<16x512xf32> to vector<16x128xf32>
    %16 = vector.extract_strided_slice %13 {offsets = [0, 128], sizes = [16, 128], strides = [1, 1]} : vector<16x512xf32> to vector<16x128xf32>
    %17 = arith.maximumf %15, %16 : vector<16x128xf32>
    %18 = vector.extract_strided_slice %13 {offsets = [0, 256], sizes = [16, 128], strides = [1, 1]} : vector<16x512xf32> to vector<16x128xf32>
    %19 = arith.maximumf %17, %18 : vector<16x128xf32>
    %20 = vector.extract_strided_slice %13 {offsets = [0, 384], sizes = [16, 128], strides = [1, 1]} : vector<16x512xf32> to vector<16x128xf32>
    %21 = arith.maximumf %19, %20 : vector<16x128xf32>
    %c64_i32 = arith.constant 64 : i32
    %22 = tpu.dynamic_rotate %21 by %c64_i32 dim 1 : vector<16x128xf32>, i32 -> vector<16x128xf32>
    %23 = arith.maximumf %21, %22 : vector<16x128xf32>
    %c32_i32 = arith.constant 32 : i32
    %24 = tpu.dynamic_rotate %23 by %c32_i32 dim 1 : vector<16x128xf32>, i32 -> vector<16x128xf32>
    %25 = arith.maximumf %23, %24 : vector<16x128xf32>
    %26 = vector.broadcast %14 : vector<1x128xf32> to vector<16x128xf32>
    %27 = arith.addf %25, %26 : vector<16x128xf32>
    %cst_10 = arith.constant 0.000000e+00 : f32
    %28 = vector.broadcast %cst_10 : f32 to vector<16x128xf32>
    %29 = arith.maximumf %27, %28 : vector<16x128xf32>
    %c0_11 = arith.constant 0 : index
    %c0_12 = arith.constant 0 : index
    %30 = vector.load %arg5[%c0_11, %c0_12] : memref<16x128xf32, #tpu.memory_space<vmem>>, vector<16x128xf32>
    tpu.vector_store %arg5[%c0_11, %c0_12], %29 {strides = array<i32>} : memref<16x128xf32, #tpu.memory_space<vmem>>, vector<16x128xf32>,
    return
  }
  func.func @transform_0(%arg0: i32) -> (i32, i32) {
    %c0_i32 = arith.constant 0 : i32
    %c0_i32_0 = arith.constant 0 : i32
    return %arg0, %c0_i32 : i32, i32
  }
  func.func @transform_1(%arg0: i32) -> (i32, i32) {
    %c0_i32 = arith.constant 0 : i32
    %c0_i32_0 = arith.constant 0 : i32
    %c0_i32_1 = arith.constant 0 : i32
    return %c0_i32, %c0_i32_0 : i32, i32
  }
  func.func @transform_2(%arg0: i32) -> (i32, i32) {
    %c0_i32 = arith.constant 0 : i32
    %c0_i32_0 = arith.constant 0 : i32
    %c0_i32_1 = arith.constant 0 : i32
    return %c0_i32, %c0_i32_0 : i32, i32
  }
  func.func @transform_3(%arg0: i32) -> (i32, i32) {
    %c0_i32 = arith.constant 0 : i32
    %c0_i32_0 = arith.constant 0 : i32
    %c0_i32_1 = arith.constant 0 : i32
    return %c0_i32, %c0_i32_0 : i32, i32
  }
  func.func @transform_4(%arg0: i32) -> (i32, i32) {
    %c0_i32 = arith.constant 0 : i32
    %c0_i32_0 = arith.constant 0 : i32
    return %arg0, %c0_i32 : i32, i32
  }
}

</mosaic_0001>

<bundles_post_ra>
// kernel: tpu_custom_call.1
= control target key start
LH: loop header
LB: loop body
LE: loop exit
PB: predicated region body
PF: predicated region fallthrough
CT: control target
= control target key end

     0   :  { %9 = vsyncpa [#allocation3], 0  ;;  %s2338_s0 = inlined_call_operand.hbm [shape: s32[16,16], index: 0, kind: input, shape index: {}]   ;;  %s2339_s1 = inlined_call_operand.hbm [shape: f32[16,1024], index: 1, kind: input, shape index: {}]   ;;  %s2340_s2 = inlined_call_operand.hbm [shape: f32[1024,512], index: 2, kind: input, shape index: {}]   ;;  %s2341_s3 = inlined_call_operand.hbm [shape: f32[1,128], index: 3, kind: input, shape index: {}]   ;;  %s2342_s4 = inlined_call_operand.hbm [shape: f32[16,128], index: 4, kind: output, shape index: {}]  }
   0x1   :  { %10 = vsyncpa [#allocation6], 0 }
   0x2   :  { %11 = vsyncpa [#allocation9], 0  ;;  %s30_s17 = sshll.u32 %s2339_s1, 4  ;;  %s31_s17 = int_to_ptr.hbm [resolvable:$true] %s30_s17 }
   0x3   :  { %12 = vsyncpa [#allocation4], 0  ;;  %s1865_s18 = smov [#allocation5]   ;;  %s17_s22 = sshll.u32 %s2338_s0, 4  ;;  %s18_s22 = int_to_ptr.hbm [resolvable:$true] %s17_s22 }
   0x4   :  { %s32_s19 = sshll.u32 %s1865_s18, 4  ;;  %s1866_s23 = smov 1024   ;;  %s33_s19 = int_to_ptr.vmem [resolvable:$true] %s32_s19 }
   0x5   :  { %s1867_s24 = smov 64   ;;  %s1868_s25 = smov [#allocation2]  }
   0x6   :  { %38 = dma.hbm_to_vmem [thread:$0]  %s31_s17, 2048, %s33_s19, [#allocation6], %s1866_s23, %s1866_s23, %s1867_s24  }
   0x7   :  { %s19_s26 = sshll.u32 %s1868_s25, 4  ;;  %s1869_s27 = smov 128   ;;  %s20_s26 = int_to_ptr.vmem [resolvable:$true] %s19_s26 }
   0x8   :  { %s1870_s28 = smov 8   ;;  %s43_s30 = sshll.u32 %s2340_s2, 4  ;;  %s44_s30 = int_to_ptr.hbm [resolvable:$true] %s43_s30 }
   0x9   :  { %25 = dma.hbm_to_vmem [thread:$0]  %s18_s22, 256, %s20_s26, [#allocation3], %s1869_s27, %s1869_s27, %s1870_s28  }
   0xa   :  { %s1871_s0 = smov [#allocation7]   ;;  %s57_s8 = sshll.u32 %s2341_s3, 4  ;;  %s58_s8 = int_to_ptr.hbm [resolvable:$true] %s57_s8 }
   0xb   :  { %s45_s5 = sshll.u32 %s1871_s0, 4  ;;  %s1872_s9 = smov 512   ;;  %s46_s5 = int_to_ptr.vmem [resolvable:$true] %s45_s5 }
   0xc   :  { %s1873_s10 = smov 32   ;;  %s1874_s11 = smov [#allocation8]  }
   0xd   :  { %51 = dma.hbm_to_vmem [thread:$0]  %s44_s30, 65536, %s46_s5, [#allocation6], %s1872_s9, %s1872_s9, %s1873_s10  }
   0xe   :  { %s59_s12 = sshll.u32 %s1874_s11, 4  ;;  %s60_s12 = int_to_ptr.vmem [resolvable:$true] %s59_s12 }
   0xf   :  { %62 = dma.hbm_to_vmem [thread:$0]  %s58_s8, 16, %s60_s12, [#allocation9]  }
  0x10   :  { %1857 = dma.done.wait [#allocation3], 256  }
  0x11   :  { %1858 = vsyncadd [#allocation3], 4294967040 }
  0x12   :  { %1859 = dma.done.wait [#allocation6], 67584  }
  0x13   :  { %1860 = vsyncadd [#allocation6], 4294899712 }
  0x14   :  { %1861 = dma.done.wait [#allocation9], 16  }
  0x15   :  { %1862 = vsyncadd [#allocation9], 4294967280  ;;  %v91_v0 = vld [vmem:[#allocation5 + $0x40] sm:$0xff]  ;;  %v92_v1 = vld [vmem:[#allocation5 + $0x48] sm:$0xff]  ;;  %vm99_vm0 = vcmask 130048   ;;  %s1876_s2 = smov [#allocation10]  }
  0x16   :  { %v93_v2 = vld [vmem:[#allocation5 + $0x50] sm:$0xff]  ;;  %120 = vmatpush.msra.mxu0 %v91_v0  ;;  %143 = vmatpush.msra.mxu1 %v92_v1  ;;  %v94_v3 = vld [vmem:[#allocation5 + $0x58] sm:$0xff]  ;;  %v83_v4 = vld [vmem:[#allocation5] sm:$0xff]  ;;  %s1627_s3 = sshll.u32 %s1876_s2, 4  ;;  %s1629_s15 = sshll.u32 %s2342_s4, 4  ;;  %s1628_s3 = int_to_ptr.vmem [resolvable:$true] %s1627_s3  ;;  %s1630_s15 = int_to_ptr.hbm [resolvable:$true] %s1629_s15 }
  0x17   :  { %v84_v5 = vld [vmem:[#allocation5 + $0x8] sm:$0xff]  ;;  %166 = vmatpush.msra.mxu2 %v93_v2  ;;  %189 = vmatpush.msra.mxu3 %v94_v3  ;;  %v85_v6 = vld [vmem:[#allocation5 + $0x10] sm:$0xff]  ;;  %v86_v7 = vld [vmem:[#allocation5 + $0x18] sm:$0xff] }
  0x18   :  { %v79_v8 = vld [vmem:[#allocation2] sm:$0xff]  ;;  %121 = vmatpush.msra.mxu0 %v83_v4  ;;  %144 = vmatpush.msra.mxu1 %v84_v5  ;;  %v95_v10 = vld [vmem:[#allocation5 + $0x60] sm:$0xff]  ;;  %v96_v11 = vld [vmem:[#allocation5 + $0x68] sm:$0xff] }
  0x19   :  { %v1919_v9 = vcvt.s32.f32 %v79_v8  ;;  %167 = vmatpush.msra.mxu2 %v85_v6  ;;  %190 = vmatpush.msra.mxu3 %v86_v7  ;;  %v97_v12 = vld [vmem:[#allocation5 + $0x70] sm:$0xff]  ;;  %v98_v13 = vld [vmem:[#allocation5 + $0x78] sm:$0xff]  ;;  %v87_v15 = vld [vmem:[#allocation5 + $0x20] sm:$0xff] }
  0x1a   :  { %v80_v14 = vld [vmem:[#allocation2 + $0x8] sm:$0xff]  ;;  %v88_v16 = vld [vmem:[#allocation5 + $0x28] sm:$0xff]  ;;  %212 = vmatpush.msrb.mxu0 %v95_v10  ;;  %235 = vmatpush.msrb.mxu1 %v96_v11  ;;  %v89_v17 = vld [vmem:[#allocation5 + $0x30] sm:$0xff] }
  0x1b   :  { %1644 = vmatmul.msk.f32.vlgmr.msra.gmra.mxu0 %vm99_vm0, %v1919_v9  ;;  %1646 = vmatmul.msk.f32.vlgmr.msra.gmra.mxu1 %vm99_vm0, %v1919_v9  ;;  %v90_v18 = vld [vmem:[#allocation5 + $0x38] sm:$0xff]  ;;  %v407_v19 = vld [vmem:[#allocation7 + $0x1e0] sm:$0xff]  ;;  %v1929_v21 = vcvt.s32.f32 %v80_v14 }
  0x1c   :  { %1648 = vmatmul.msk.f32.vlgmr.msra.gmra.mxu2 %vm99_vm0, %v1919_v9  ;;  %1650 = vmatmul.msk.f32.vlgmr.msra.gmra.mxu3 %vm99_vm0, %v1919_v9  ;;  %v471_v20 = vld [vmem:[#allocation7 + $0x3e0] sm:$0xff] }
  0x1d   :  { %258 = vmatpush.msrb.mxu2 %v97_v12  ;;  %281 = vmatpush.msrb.mxu3 %v98_v13  ;;  %v535_v22 = vld [vmem:[#allocation7 + $0x5e0] sm:$0xff] }
  0x1e   :  { %213 = vmatpush.msrb.mxu0 %v87_v15  ;;  %236 = vmatpush.msrb.mxu1 %v88_v16  ;;  %v599_v23 = vld [vmem:[#allocation7 + $0x7e0] sm:$0xff] }
  0x1f   :  { %259 = vmatpush.msrb.mxu2 %v89_v17  ;;  %282 = vmatpush.msrb.mxu3 %v90_v18  ;;  %v403_v24 = vld [vmem:[#allocation7 + $0x1c0] sm:$0xff] }
  0x20   :  { %859 = vmatpush.msra.mxu0 %v407_v19  ;;  %882 = vmatpush.msra.mxu1 %v471_v20  ;;  %v467_v25 = vld [vmem:[#allocation7 + $0x3c0] sm:$0xff] }
  0x21   :  { %905 = vmatpush.msra.mxu2 %v535_v22  ;;  %928 = vmatpush.msra.mxu3 %v599_v23  ;;  %v531_v26 = vld [vmem:[#allocation7 + $0x5c0] sm:$0xff] }
  0x22   :  { %v595_v27 = vld [vmem:[#allocation7 + $0x7c0] sm:$0xff]  ;;  %860 = vmatpush.msra.mxu0 %v403_v24  ;;  %883 = vmatpush.msra.mxu1 %v467_v25 }
  0x23   :  { %1645 = vmatmul.msk.f32.gmra.mxu0 %vm99_vm0, %v1929_v21  ;;  %1647 = vmatmul.msk.f32.gmra.mxu1 %vm99_vm0, %v1929_v21  ;;  %v399_v28 = vld [vmem:[#allocation7 + $0x1a0] sm:$0xff] }
  0x24   :  { %1649 = vmatmul.msk.f32.gmra.mxu2 %vm99_vm0, %v1929_v21  ;;  %1651 = vmatmul.msk.f32.gmra.mxu3 %vm99_vm0, %v1929_v21  ;;  %v463_v29 = vld [vmem:[#allocation7 + $0x3a0] sm:$0xff] }
  0x25   :  { %v527_v30 = vld [vmem:[#allocation7 + $0x5a0] sm:$0xff]  ;;  %906 = vmatpush.msra.mxu2 %v531_v26  ;;  %929 = vmatpush.msra.mxu3 %v595_v27 }
  0x26   :  { %v591_v31 = vld [vmem:[#allocation7 + $0x7a0] sm:$0xff]  ;;  %861 = vmatpush.msra.mxu0 %v399_v28  ;;  %884 = vmatpush.msra.mxu1 %v463_v29 }
  0x27   :  { %v395_v32 = vld [vmem:[#allocation7 + $0x180] sm:$0xff]  ;;  %907 = vmatpush.msra.mxu2 %v527_v30  ;;  %930 = vmatpush.msra.mxu3 %v591_v31 }
  0x28   :  { %v459_v33 = vld [vmem:[#allocation7 + $0x380] sm:$0xff]  ;;  %862 = vmatpush.msra.mxu0 %v395_v32 }
  0x29   :  { %v523_v34 = vld [vmem:[#allocation7 + $0x580] sm:$0xff]  ;;  %885 = vmatpush.msra.mxu1 %v459_v33 }
  0x2a   :  { %v587_v35 = vld [vmem:[#allocation7 + $0x780] sm:$0xff]  ;;  %908 = vmatpush.msra.mxu2 %v523_v34 }
  0x2b   :  { %v391_v36 = vld [vmem:[#allocation7 + $0x160] sm:$0xff]  ;;  %931 = vmatpush.msra.mxu3 %v587_v35  ;;  %1652 = vmatmul.msk.f32.vlgmr.msrb.gmra.mxu0 %vm99_vm0, %v1919_v9 }
  0x2c   :  { %v455_v37 = vld [vmem:[#allocation7 + $0x360] sm:$0xff]  ;;  %1654 = vmatmul.msk.f32.vlgmr.msrb.gmra.mxu1 %vm99_vm0, %v1919_v9  ;;  %1656 = vmatmul.msk.f32.vlgmr.msrb.gmra.mxu2 %vm99_vm0, %v1919_v9 }
  0x2d   :  { %v519_v38 = vld [vmem:[#allocation7 + $0x560] sm:$0xff]  ;;  %1658 = vmatmul.msk.f32.vlgmr.msrb.gmra.mxu3 %vm99_vm0, %v1919_v9  ;;  %863 = vmatpush.msra.mxu0 %v391_v36 }
  0x2e   :  { %v583_v39 = vld [vmem:[#allocation7 + $0x760] sm:$0xff]  ;;  %886 = vmatpush.msra.mxu1 %v455_v37  ;;  %909 = vmatpush.msra.mxu2 %v519_v38 }
  0x2f   :  { %v387_v40 = vld [vmem:[#allocation7 + $0x140] sm:$0xff]  ;;  %932 = vmatpush.msra.mxu3 %v583_v39 }
  0x30   :  { %v451_v41 = vld [vmem:[#allocation7 + $0x340] sm:$0xff]  ;;  %864 = vmatpush.msra.mxu0 %v387_v40 }
  0x31   :  { %v515_v42 = vld [vmem:[#allocation7 + $0x540] sm:$0xff]  ;;  %887 = vmatpush.msra.mxu1 %v451_v41 }
  0x32   :  { %v579_v43 = vld [vmem:[#allocation7 + $0x740] sm:$0xff]  ;;  %910 = vmatpush.msra.mxu2 %v515_v42 }
  0x33   :  { %v383_v44 = vld [vmem:[#allocation7 + $0x120] sm:$0xff]  ;;  %933 = vmatpush.msra.mxu3 %v579_v43  ;;  %1653 = vmatmul.msk.f32.gmra.mxu0 %vm99_vm0, %v1929_v21 }
  0x34   :  { %v447_v45 = vld [vmem:[#allocation7 + $0x320] sm:$0xff]  ;;  %865 = vmatpush.msra.mxu0 %v383_v44  ;;  %1655 = vmatmul.msk.f32.gmra.mxu1 %vm99_vm0, %v1929_v21 }
  0x35   :  { %v511_v46 = vld [vmem:[#allocation7 + $0x520] sm:$0xff]  ;;  %888 = vmatpush.msra.mxu1 %v447_v45  ;;  %1657 = vmatmul.msk.f32.gmra.mxu2 %vm99_vm0, %v1929_v21 }
  0x36   :  { %v575_v47 = vld [vmem:[#allocation7 + $0x720] sm:$0xff]  ;;  %911 = vmatpush.msra.mxu2 %v511_v46  ;;  %1659 = vmatmul.msk.f32.gmra.mxu3 %vm99_vm0, %v1929_v21 }
  0x37   :  { %v379_v48 = vld [vmem:[#allocation7 + $0x100] sm:$0xff]  ;;  %934 = vmatpush.msra.mxu3 %v575_v47 }
  0x38   :  { %v443_v49 = vld [vmem:[#allocation7 + $0x300] sm:$0xff]  ;;  %866 = vmatpush.msra.mxu0 %v379_v48 }
  0x39   :  { %v507_v50 = vld [vmem:[#allocation7 + $0x500] sm:$0xff]  ;;  %889 = vmatpush.msra.mxu1 %v443_v49 }
  0x3a   :  { %v571_v51 = vld [vmem:[#allocation7 + $0x700] sm:$0xff]  ;;  %912 = vmatpush.msra.mxu2 %v507_v50 }
  0x3b   :  { %v375_v52 = vld [vmem:[#allocation7 + $0xe0] sm:$0xff]  ;;  %935 = vmatpush.msra.mxu3 %v571_v51 }
  0x3c   :  { %v439_v53 = vld [vmem:[#allocation7 + $0x2e0] sm:$0xff]  ;;  %867 = vmatpush.msra.mxu0 %v375_v52 }
  0x3d   :  { %v503_v54 = vld [vmem:[#allocation7 + $0x4e0] sm:$0xff]  ;;  %890 = vmatpush.msra.mxu1 %v439_v53 }
  0x3e   :  { %v567_v55 = vld [vmem:[#allocation7 + $0x6e0] sm:$0xff]  ;;  %913 = vmatpush.msra.mxu2 %v503_v54 }
  0x3f   :  { %v371_v56 = vld [vmem:[#allocation7 + $0xc0] sm:$0xff]  ;;  %936 = vmatpush.msra.mxu3 %v567_v55 }
  0x40   :  { %v435_v57 = vld [vmem:[#allocation7 + $0x2c0] sm:$0xff]  ;;  %868 = vmatpush.msra.mxu0 %v371_v56 }
  0x41   :  { %v499_v58 = vld [vmem:[#allocation7 + $0x4c0] sm:$0xff]  ;;  %891 = vmatpush.msra.mxu1 %v435_v57 }
  0x42   :  { %v563_v59 = vld [vmem:[#allocation7 + $0x6c0] sm:$0xff]  ;;  %914 = vmatpush.msra.mxu2 %v499_v58 }
  0x43   :  { %v367_v60 = vld [vmem:[#allocation7 + $0xa0] sm:$0xff]  ;;  %937 = vmatpush.msra.mxu3 %v563_v59 }
  0x44   :  { %v431_v61 = vld [vmem:[#allocation7 + $0x2a0] sm:$0xff]  ;;  %869 = vmatpush.msra.mxu0 %v367_v60 }
  0x45   :  { %v495_v62 = vld [vmem:[#allocation7 + $0x4a0] sm:$0xff]  ;;  %892 = vmatpush.msra.mxu1 %v431_v61 }
  0x46   :  { %v559_v63 = vld [vmem:[#allocation7 + $0x6a0] sm:$0xff]  ;;  %915 = vmatpush.msra.mxu2 %v495_v62 }
  0x47   :  { %v363_v0 = vld [vmem:[#allocation7 + $0x80] sm:$0xff]  ;;  %938 = vmatpush.msra.mxu3 %v559_v63 }
  0x48   :  { %v427_v1 = vld [vmem:[#allocation7 + $0x280] sm:$0xff]  ;;  %870 = vmatpush.msra.mxu0 %v363_v0 }
  0x49   :  { %v491_v2 = vld [vmem:[#allocation7 + $0x480] sm:$0xff]  ;;  %893 = vmatpush.msra.mxu1 %v427_v1 }
  0x4a   :  { %v555_v3 = vld [vmem:[#allocation7 + $0x680] sm:$0xff]  ;;  %916 = vmatpush.msra.mxu2 %v491_v2 }
  0x4b   :  { %v359_v4 = vld [vmem:[#allocation7 + $0x60] sm:$0xff]  ;;  %939 = vmatpush.msra.mxu3 %v555_v3 }
  0x4c   :  { %v423_v5 = vld [vmem:[#allocation7 + $0x260] sm:$0xff]  ;;  %871 = vmatpush.msra.mxu0 %v359_v4 }
  0x4d   :  { %v487_v6 = vld [vmem:[#allocation7 + $0x460] sm:$0xff]  ;;  %894 = vmatpush.msra.mxu1 %v423_v5 }
  0x4e   :  { %v551_v7 = vld [vmem:[#allocation7 + $0x660] sm:$0xff]  ;;  %917 = vmatpush.msra.mxu2 %v487_v6 }
  0x4f   :  { %v355_v8 = vld [vmem:[#allocation7 + $0x40] sm:$0xff]  ;;  %940 = vmatpush.msra.mxu3 %v551_v7 }
  0x50   :  { %v419_v9 = vld [vmem:[#allocation7 + $0x240] sm:$0xff]  ;;  %872 = vmatpush.msra.mxu0 %v355_v8 }
  0x51   :  { %v483_v10 = vld [vmem:[#allocation7 + $0x440] sm:$0xff]  ;;  %895 = vmatpush.msra.mxu1 %v419_v9 }
  0x52   :  { %v547_v11 = vld [vmem:[#allocation7 + $0x640] sm:$0xff]  ;;  %918 = vmatpush.msra.mxu2 %v483_v10 }
  0x53   :  { %v351_v12 = vld [vmem:[#allocation7 + $0x20] sm:$0xff]  ;;  %941 = vmatpush.msra.mxu3 %v547_v11 }
  0x54   :  { %v415_v13 = vld [vmem:[#allocation7 + $0x220] sm:$0xff]  ;;  %873 = vmatpush.msra.mxu0 %v351_v12 }
  0x55   :  { %v479_v14 = vld [vmem:[#allocation7 + $0x420] sm:$0xff]  ;;  %896 = vmatpush.msra.mxu1 %v415_v13 }
  0x56   :  { %v543_v15 = vld [vmem:[#allocation7 + $0x620] sm:$0xff]  ;;  %919 = vmatpush.msra.mxu2 %v479_v14 }
  0x57   :  { %v347_v16 = vld [vmem:[#allocation7] sm:$0xff]  ;;  %942 = vmatpush.msra.mxu3 %v543_v15 }
  0x58   :  { %v411_v17 = vld [vmem:[#allocation7 + $0x200] sm:$0xff]  ;;  %874 = vmatpush.msra.mxu0 %v347_v16 }
  0x59   :  { %v663_v18 = vld [vmem:[#allocation7 + $0x9e0] sm:$0xff]  ;;  %897 = vmatpush.msra.mxu1 %v411_v17 }
  0x5a   :  { %v727_v19 = vld [vmem:[#allocation7 + $0xbe0] sm:$0xff]  ;;  %951 = vmatpush.msrb.mxu0 %v663_v18 }
  0x5b   :  { %v475_v20 = vld [vmem:[#allocation7 + $0x400] sm:$0xff]  ;;  %974 = vmatpush.msrb.mxu1 %v727_v19 }
  0x5c   :  { %v539_v21 = vld [vmem:[#allocation7 + $0x600] sm:$0xff]  ;;  %920 = vmatpush.msra.mxu2 %v475_v20  ;;  %v290_v20 = vlaneseq }
  0x5d   :  { %v659_v22 = vld [vmem:[#allocation7 + $0x9c0] sm:$0xff]  ;;  %943 = vmatpush.msra.mxu3 %v539_v21 }
  0x5e   :  { %v723_v23 = vld [vmem:[#allocation7 + $0xbc0] sm:$0xff]  ;;  %952 = vmatpush.msrb.mxu0 %v659_v22  ;;  %v1955_v21 = vand.u32 127, %v290_v20  ;;  %v372_v20 = vld [vmem:[#allocation7 + $0xc8] sm:$0xff] }
  0x5f   :  { %v791_v24 = vld [vmem:[#allocation7 + $0xde0] sm:$0xff]  ;;  %975 = vmatpush.msrb.mxu1 %v723_v23 }
  0x60   :  { %v855_v25 = vld [vmem:[#allocation7 + $0xfe0] sm:$0xff]  ;;  %997 = vmatpush.msrb.mxu2 %v791_v24  ;;  %v292_v22 = vadd.s32 128, %v1955_v21  ;;  %v299_v23 = vand.u32 63, %v1955_v21 }
  0x61   :  { %v655_v26 = vld [vmem:[#allocation7 + $0x9a0] sm:$0xff]  ;;  %1020 = vmatpush.msrb.mxu3 %v855_v25  ;;  %v293_v25 = vadd.s32 256, %v1955_v21 }
  0x62   :  { %v719_v27 = vld [vmem:[#allocation7 + $0xba0] sm:$0xff]  ;;  %953 = vmatpush.msrb.mxu0 %v655_v26  ;;  %v300_v24 = vand.u32 63, %v292_v22  ;;  %v294_v26 = vadd.s32 384, %v1955_v21 }
  0x63   :  { %v787_v28 = vld [vmem:[#allocation7 + $0xdc0] sm:$0xff]  ;;  %976 = vmatpush.msrb.mxu1 %v719_v27  ;;  %v1961_v27 = vcvt.s32.f32 %v299_v23 }
  0x64   :  { %v851_v29 = vld [vmem:[#allocation7 + $0xfc0] sm:$0xff]  ;;  %998 = vmatpush.msrb.mxu2 %v787_v28  ;;  %v1963_v28 = vcvt.s32.f32 %v300_v24  ;;  %v512_v24 = vld [vmem:[#allocation7 + $0x528] sm:$0xff] }
  0x65   :  { %v651_v30 = vld [vmem:[#allocation7 + $0x980] sm:$0xff]  ;;  %1021 = vmatpush.msrb.mxu3 %v851_v29 }
  0x66   :  { %v715_v31 = vld [vmem:[#allocation7 + $0xb80] sm:$0xff]  ;;  %954 = vmatpush.msrb.mxu0 %v651_v30 }
  0x67   :  { %v783_v32 = vld [vmem:[#allocation7 + $0xda0] sm:$0xff]  ;;  %977 = vmatpush.msrb.mxu1 %v715_v31  ;;  %v408_v31 = vld [vmem:[#allocation7 + $0x1e8] sm:$0xff] }
  0x68   :  { %v847_v33 = vld [vmem:[#allocation7 + $0xfa0] sm:$0xff]  ;;  %999 = vmatpush.msrb.mxu2 %v783_v32  ;;  %v472_v32 = vld [vmem:[#allocation7 + $0x3e8] sm:$0xff] }
  0x69   :  { %v647_v34 = vld [vmem:[#allocation7 + $0x960] sm:$0xff]  ;;  %1022 = vmatpush.msrb.mxu3 %v847_v33  ;;  %v301_v33 = vand.u32 63, %v293_v25  ;;  %v576_v25 = vld [vmem:[#allocation7 + $0x728] sm:$0xff] }
  0x6a   :  { %v711_v35 = vld [vmem:[#allocation7 + $0xb60] sm:$0xff]  ;;  %955 = vmatpush.msrb.mxu0 %v647_v34  ;;  %v302_v34 = vand.u32 63, %v294_v26 }
  0x6b   :  { %v779_v36 = vld [vmem:[#allocation7 + $0xd80] sm:$0xff]  ;;  %978 = vmatpush.msrb.mxu1 %v711_v35  ;;  %v1875_v35 = vmov 1.0  }
  0x6c   :  { %v843_v37 = vld [vmem:[#allocation7 + $0xf80] sm:$0xff]  ;;  %1000 = vmatpush.msrb.mxu2 %v779_v36  ;;  %v404_v36 = vld [vmem:[#allocation7 + $0x1c8] sm:$0xff] }
  0x6d   :  { %v643_v38 = vld [vmem:[#allocation7 + $0x940] sm:$0xff]  ;;  %1023 = vmatpush.msrb.mxu3 %v843_v37  ;;  %v468_v37 = vld [vmem:[#allocation7 + $0x3c8] sm:$0xff] }
  0x6e   :  { %v707_v39 = vld [vmem:[#allocation7 + $0xb40] sm:$0xff]  ;;  %956 = vmatpush.msrb.mxu0 %v643_v38  ;;  %v1981_v38 = vcvt.s32.f32 %v301_v33  ;;  %v432_v33 = vld [vmem:[#allocation7 + $0x2a8] sm:$0xff] }
  0x6f   :  { %v775_v40 = vld [vmem:[#allocation7 + $0xd60] sm:$0xff]  ;;  %979 = vmatpush.msrb.mxu1 %v707_v39  ;;  %v1983_v39 = vcvt.s32.f32 %v302_v34  ;;  %v508_v34 = vld [vmem:[#allocation7 + $0x508] sm:$0xff] }
  0x70   :  { %v839_v41 = vld [vmem:[#allocation7 + $0xf60] sm:$0xff]  ;;  %1001 = vmatpush.msrb.mxu2 %v775_v40  ;;  %v400_v40 = vld [vmem:[#allocation7 + $0x1a8] sm:$0xff] }
  0x71   :  { %v639_v42 = vld [vmem:[#allocation7 + $0x920] sm:$0xff]  ;;  %1024 = vmatpush.msrb.mxu3 %v839_v41  ;;  %v464_v41 = vld [vmem:[#allocation7 + $0x3a8] sm:$0xff] }
  0x72   :  { %v703_v43 = vld [vmem:[#allocation7 + $0xb20] sm:$0xff]  ;;  %957 = vmatpush.msrb.mxu0 %v639_v42 }
  0x73   :  { %v771_v44 = vld [vmem:[#allocation7 + $0xd40] sm:$0xff]  ;;  %980 = vmatpush.msrb.mxu1 %v703_v43 }
  0x74   :  { %v835_v45 = vld [vmem:[#allocation7 + $0xf40] sm:$0xff]  ;;  %1002 = vmatpush.msrb.mxu2 %v771_v44  ;;  %v396_v44 = vld [vmem:[#allocation7 + $0x188] sm:$0xff] }
  0x75   :  { %v635_v46 = vld [vmem:[#allocation7 + $0x900] sm:$0xff]  ;;  %1025 = vmatpush.msrb.mxu3 %v835_v45  ;;  %v460_v45 = vld [vmem:[#allocation7 + $0x388] sm:$0xff] }
  0x76   :  { %v699_v47 = vld [vmem:[#allocation7 + $0xb00] sm:$0xff]  ;;  %958 = vmatpush.msrb.mxu0 %v635_v46  ;;  %v295_v46 = vadd.s32 512, %v1955_v21 }
  0x77   :  { %v767_v48 = vld [vmem:[#allocation7 + $0xd20] sm:$0xff]  ;;  %981 = vmatpush.msrb.mxu1 %v699_v47  ;;  %v296_v47 = vadd.s32 640, %v1955_v21 }
  0x78   :  { %v831_v49 = vld [vmem:[#allocation7 + $0xf20] sm:$0xff]  ;;  %1003 = vmatpush.msrb.mxu2 %v767_v48 }
  0x79   :  { %v631_v50 = vld [vmem:[#allocation7 + $0x8e0] sm:$0xff]  ;;  %1026 = vmatpush.msrb.mxu3 %v831_v49 }
  0x7a   :  { %v695_v51 = vld [vmem:[#allocation7 + $0xae0] sm:$0xff]  ;;  %959 = vmatpush.msrb.mxu0 %v631_v50  ;;  %v536_v50 = vld [vmem:[#allocation7 + $0x5e8] sm:$0xff] }
  0x7b   :  { %v763_v52 = vld [vmem:[#allocation7 + $0xd00] sm:$0xff]  ;;  %982 = vmatpush.msrb.mxu1 %v695_v51  ;;  %v600_v51 = vld [vmem:[#allocation7 + $0x7e8] sm:$0xff] }
  0x7c   :  { %v827_v53 = vld [vmem:[#allocation7 + $0xf00] sm:$0xff]  ;;  %1004 = vmatpush.msrb.mxu2 %v763_v52  ;;  %v392_v52 = vld [vmem:[#allocation7 + $0x168] sm:$0xff] }
  0x7d   :  { %v627_v54 = vld [vmem:[#allocation7 + $0x8c0] sm:$0xff]  ;;  %1027 = vmatpush.msrb.mxu3 %v827_v53  ;;  %v456_v53 = vld [vmem:[#allocation7 + $0x368] sm:$0xff] }
  0x7e   :  { %v691_v55 = vld [vmem:[#allocation7 + $0xac0] sm:$0xff]  ;;  %960 = vmatpush.msrb.mxu0 %v627_v54  ;;  %v532_v54 = vld [vmem:[#allocation7 + $0x5c8] sm:$0xff] }
  0x7f   :  { %v759_v56 = vld [vmem:[#allocation7 + $0xce0] sm:$0xff]  ;;  %983 = vmatpush.msrb.mxu1 %v691_v55  ;;  %v596_v55 = vld [vmem:[#allocation7 + $0x7c8] sm:$0xff] }
  0x80   :  { %v823_v57 = vld [vmem:[#allocation7 + $0xee0] sm:$0xff]  ;;  %1005 = vmatpush.msrb.mxu2 %v759_v56  ;;  %v303_v56 = vand.u32 63, %v295_v46  ;;  %v568_v46 = vld [vmem:[#allocation7 + $0x6e8] sm:$0xff] }
  0x81   :  { %v623_v58 = vld [vmem:[#allocation7 + $0x8a0] sm:$0xff]  ;;  %1028 = vmatpush.msrb.mxu3 %v823_v57  ;;  %v304_v57 = vand.u32 63, %v296_v47  ;;  %v360_v47 = vld [vmem:[#allocation7 + $0x68] sm:$0xff] }
  0x82   :  { %v687_v59 = vld [vmem:[#allocation7 + $0xaa0] sm:$0xff]  ;;  %961 = vmatpush.msrb.mxu0 %v623_v58  ;;  %v388_v58 = vld [vmem:[#allocation7 + $0x148] sm:$0xff] }
  0x83   :  { %v755_v60 = vld [vmem:[#allocation7 + $0xcc0] sm:$0xff]  ;;  %984 = vmatpush.msrb.mxu1 %v687_v59  ;;  %v452_v59 = vld [vmem:[#allocation7 + $0x348] sm:$0xff] }
  0x84   :  { %v819_v61 = vld [vmem:[#allocation7 + $0xec0] sm:$0xff]  ;;  %1006 = vmatpush.msrb.mxu2 %v755_v60  ;;  %v528_v60 = vld [vmem:[#allocation7 + $0x5a8] sm:$0xff] }
  0x85   :  { %v619_v62 = vld [vmem:[#allocation7 + $0x880] sm:$0xff]  ;;  %1029 = vmatpush.msrb.mxu3 %v819_v61  ;;  %v592_v61 = vld [vmem:[#allocation7 + $0x7a8] sm:$0xff] }
  0x86   :  { %v683_v63 = vld [vmem:[#allocation7 + $0xa80] sm:$0xff]  ;;  %962 = vmatpush.msrb.mxu0 %v619_v62  ;;  %v384_v62 = vld [vmem:[#allocation7 + $0x128] sm:$0xff] }
  0x87   :  { %v751_v0 = vld [vmem:[#allocation7 + $0xca0] sm:$0xff]  ;;  %985 = vmatpush.msrb.mxu1 %v683_v63  ;;  %v448_v63 = vld [vmem:[#allocation7 + $0x328] sm:$0xff] }
  0x88   :  { %v815_v1 = vld [vmem:[#allocation7 + $0xea0] sm:$0xff]  ;;  %1007 = vmatpush.msrb.mxu2 %v751_v0  ;;  %v297_v0 = vadd.s32 768, %v1955_v21 }
  0x89   :  { %v615_v2 = vld [vmem:[#allocation7 + $0x860] sm:$0xff]  ;;  %1030 = vmatpush.msrb.mxu3 %v815_v1  ;;  %v298_v1 = vadd.s32 896, %v1955_v21  ;;  %v436_v21 = vld [vmem:[#allocation7 + $0x2c8] sm:$0xff] }
  0x8a   :  { %v679_v3 = vld [vmem:[#allocation7 + $0xa60] sm:$0xff]  ;;  %963 = vmatpush.msrb.mxu0 %v615_v2 }
  0x8b   :  { %v747_v4 = vld [vmem:[#allocation7 + $0xc80] sm:$0xff]  ;;  %986 = vmatpush.msrb.mxu1 %v679_v3 }
  0x8c   :  { %v811_v5 = vld [vmem:[#allocation7 + $0xe80] sm:$0xff]  ;;  %1008 = vmatpush.msrb.mxu2 %v747_v4  ;;  %v524_v4 = vld [vmem:[#allocation7 + $0x588] sm:$0xff] }
  0x8d   :  { %v611_v6 = vld [vmem:[#allocation7 + $0x840] sm:$0xff]  ;;  %1031 = vmatpush.msrb.mxu3 %v811_v5  ;;  %v588_v5 = vld [vmem:[#allocation7 + $0x788] sm:$0xff] }
  0x8e   :  { %v675_v7 = vld [vmem:[#allocation7 + $0xa40] sm:$0xff]  ;;  %964 = vmatpush.msrb.mxu0 %v611_v6  ;;  %v2025_v6 = vcvt.s32.f32 %v303_v56  ;;  %v560_v56 = vld [vmem:[#allocation7 + $0x6a8] sm:$0xff] }
  0x8f   :  { %v607_v8 = vld [vmem:[#allocation7 + $0x820] sm:$0xff]  ;;  %987 = vmatpush.msrb.mxu1 %v675_v7  ;;  %v2027_v7 = vcvt.s32.f32 %v304_v57 }
  0x90   :  { %v671_v9 = vld [vmem:[#allocation7 + $0xa20] sm:$0xff]  ;;  %965 = vmatpush.msrb.mxu0 %v607_v8 }
  0x91   :  { %988 = vmatpush.msrb.mxu1 %v671_v9  ;;  %v603_v10 = vld [vmem:[#allocation7 + $0x800] sm:$0xff] }
  0x92   :  { %v667_v11 = vld [vmem:[#allocation7 + $0xa00] sm:$0xff]  ;;  %966 = vmatpush.msrb.mxu0 %v603_v10  ;;  %v380_v10 = vld [vmem:[#allocation7 + $0x108] sm:$0xff] }
  0x93   :  { %v743_v12 = vld [vmem:[#allocation7 + $0xc60] sm:$0xff]  ;;  %989 = vmatpush.msrb.mxu1 %v667_v11  ;;  %v444_v11 = vld [vmem:[#allocation7 + $0x308] sm:$0xff] }
  0x94   :  { %v807_v13 = vld [vmem:[#allocation7 + $0xe60] sm:$0xff]  ;;  %1009 = vmatpush.msrb.mxu2 %v743_v12  ;;  %v520_v12 = vld [vmem:[#allocation7 + $0x568] sm:$0xff] }
  0x95   :  { %1032 = vmatpush.msrb.mxu3 %v807_v13  ;;  %v739_v14 = vld [vmem:[#allocation7 + $0xc40] sm:$0xff]  ;;  %v584_v13 = vld [vmem:[#allocation7 + $0x768] sm:$0xff] }
  0x96   :  { %v803_v15 = vld [vmem:[#allocation7 + $0xe40] sm:$0xff]  ;;  %1010 = vmatpush.msrb.mxu2 %v739_v14  ;;  %v305_v14 = vand.u32 63, %v297_v0  ;;  %v412_v0 = vld [vmem:[#allocation7 + $0x208] sm:$0xff] }
  0x97   :  { %1033 = vmatpush.msrb.mxu3 %v803_v15  ;;  %v735_v16 = vld [vmem:[#allocation7 + $0xc20] sm:$0xff]  ;;  %v306_v15 = vand.u32 63, %v298_v1  ;;  %v488_v1 = vld [vmem:[#allocation7 + $0x468] sm:$0xff] }
  0x98   :  { %v799_v17 = vld [vmem:[#allocation7 + $0xe20] sm:$0xff]  ;;  %1011 = vmatpush.msrb.mxu2 %v735_v16  ;;  %v1965_v29 = vpop.f32.mrf.mxu0  ;;  %v1967_v30 = vpop.f32.mrf.mxu1  ;;  %v376_v16 = vld [vmem:[#allocation7 + $0xe8] sm:$0xff]  ;;  %v2057_v22 = vcvt.s32.f32 %v305_v14 }
  0x99   :  { %1034 = vmatpush.msrb.mxu3 %v799_v17  ;;  %v731_v18 = vld [vmem:[#allocation7 + $0xc00] sm:$0xff]  ;;  %vm315_vm1 = vcmp.eq.f32.partialorder %v1965_v29, %v1961_v27  ;;  %vm316_vm2 = vcmp.eq.f32.partialorder %v1967_v30, %v1963_v28  ;;  %v440_v17 = vld [vmem:[#allocation7 + $0x2e8] sm:$0xff]  ;;  %v2059_v23 = vcvt.s32.f32 %v306_v15  ;;  %v542_v29 = vld [vmem:[#allocation7 + $0x618] sm:$0xff] }
  0x9a   :  { %v795_v19 = vld [vmem:[#allocation7 + $0xe00] sm:$0xff]  ;;  %1012 = vmatpush.msrb.mxu2 %v731_v18  ;;  %1660 = vmatmul.msk.f32.vlgmr.msra.gmra.mxu0 %vm315_vm1, %v1875_v35  ;;  %v516_v18 = vld [vmem:[#allocation7 + $0x548] sm:$0xff]  ;;  %v654_v30 = vld [vmem:[#allocation7 + $0x998] sm:$0xff] }
  0x9b   :  { %1035 = vmatpush.msrb.mxu3 %v795_v19  ;;  %1662 = vmatmul.msk.f32.vlgmr.msra.gmra.mxu1 %vm316_vm2, %v1875_v35  ;;  %v580_v19 = vld [vmem:[#allocation7 + $0x748] sm:$0xff] }
  0x9c   :  { %1043 = vmatpush.msra.mxu0 %v408_v31  ;;  %1066 = vmatpush.msra.mxu1 %v472_v32  ;;  %v368_v32 = vld [vmem:[#allocation7 + $0xa8] sm:$0xff] }
  0x9d   :  { %v724_v14 = vld [vmem:[#allocation7 + $0xbc8] sm:$0xff] }
  0x9e   :  { %1044 = vmatpush.msra.mxu0 %v404_v36  ;;  %1067 = vmatpush.msra.mxu1 %v468_v37  ;;  %v572_v36 = vld [vmem:[#allocation7 + $0x708] sm:$0xff] }
  0x9f   :  { %v1985_v42 = vpop.f32.mrf.mxu2  ;;  %v1987_v43 = vpop.f32.mrf.mxu3  ;;  %v480_v15 = vld [vmem:[#allocation7 + $0x428] sm:$0xff] }
  0xa0   :  { %1045 = vmatpush.msra.mxu0 %v400_v40  ;;  %1068 = vmatpush.msra.mxu1 %v464_v41  ;;  %vm317_vm3 = vcmp.eq.f32.partialorder %v1985_v42, %v1981_v38  ;;  %vm318_vm4 = vcmp.eq.f32.partialorder %v1987_v43, %v1983_v39  ;;  %v1995_v48 = vpop.f32.mrf.mxu0  ;;  %v1997_v49 = vpop.f32.mrf.mxu1  ;;  %v364_v41 = vld [vmem:[#allocation7 + $0x88] sm:$0xff]  ;;  %v646_v42 = vld [vmem:[#allocation7 + $0x958] sm:$0xff] }
  0xa1   :  { %vm323_vm5 = vcmp.eq.f32.partialorder %v1995_v48, %v1961_v27  ;;  %vm324_vm6 = vcmp.eq.f32.partialorder %v1997_v49, %v1963_v28  ;;  %1664 = vmatmul.msk.f32.vlgmr.msra.gmra.mxu2 %vm317_vm3, %v1875_v35  ;;  %1666 = vmatmul.msk.f32.vlgmr.msra.gmra.mxu3 %vm318_vm4, %v1875_v35  ;;  %v710_v43 = vld [vmem:[#allocation7 + $0xb58] sm:$0xff] }
  0xa2   :  { %1046 = vmatpush.msra.mxu0 %v396_v44  ;;  %1069 = vmatpush.msra.mxu1 %v460_v45  ;;  %v428_v44 = vld [vmem:[#allocation7 + $0x288] sm:$0xff]  ;;  %v846_v27 = vld [vmem:[#allocation7 + $0xf98] sm:$0xff] }
  0xa3   :  { %1089 = vmatpush.msra.mxu2 %v536_v50  ;;  %1112 = vmatpush.msra.mxu3 %v600_v51  ;;  %v504_v45 = vld [vmem:[#allocation7 + $0x4e8] sm:$0xff]  ;;  %v638_v28 = vld [vmem:[#allocation7 + $0x918] sm:$0xff] }
  0xa4   :  { %1661 = vmatmul.msk.f32.gmra.mxu0 %vm323_vm5, %v1875_v35  ;;  %1663 = vmatmul.msk.f32.gmra.mxu1 %vm324_vm6, %v1875_v35  ;;  %v424_v50 = vld [vmem:[#allocation7 + $0x268] sm:$0xff]  ;;  %v702_v48 = vld [vmem:[#allocation7 + $0xb18] sm:$0xff] }
  0xa5   :  { %1047 = vmatpush.msra.mxu0 %v392_v52  ;;  %1070 = vmatpush.msra.mxu1 %v456_v53  ;;  %v500_v51 = vld [vmem:[#allocation7 + $0x4c8] sm:$0xff]  ;;  %v778_v49 = vld [vmem:[#allocation7 + $0xd78] sm:$0xff] }
  0xa6   :  { %1090 = vmatpush.msra.mxu2 %v532_v54  ;;  %1113 = vmatpush.msra.mxu3 %v596_v55  ;;  %v564_v52 = vld [vmem:[#allocation7 + $0x6c8] sm:$0xff] }
  0xa7   :  { %1048 = vmatpush.msra.mxu0 %v388_v58  ;;  %1071 = vmatpush.msra.mxu1 %v452_v59  ;;  %v2021_v2 = vpop.f32.mrf.mxu2  ;;  %v2023_v3 = vpop.f32.mrf.mxu3  ;;  %v356_v53 = vld [vmem:[#allocation7 + $0x48] sm:$0xff] }
  0xa8   :  { %1091 = vmatpush.msra.mxu2 %v528_v60  ;;  %1114 = vmatpush.msra.mxu3 %v592_v61  ;;  %vm325_vm7 = vcmp.eq.f32.partialorder %v2021_v2, %v1981_v38  ;;  %vm326_vm8 = vcmp.eq.f32.partialorder %v2023_v3, %v1983_v39  ;;  %v2033_v8 = vpop.f32.mrf.mxu0  ;;  %v420_v54 = vld [vmem:[#allocation7 + $0x248] sm:$0xff]  ;;  %v834_v38 = vld [vmem:[#allocation7 + $0xf38] sm:$0xff] }
  0xa9   :  { %v2035_v9 = vpop.f32.mrf.mxu1  ;;  %1049 = vmatpush.msra.mxu0 %v384_v62  ;;  %1072 = vmatpush.msra.mxu1 %v448_v63  ;;  %vm319_vm9 = vcmp.eq.f32.partialorder %v2033_v8, %v2025_v6  ;;  %v496_v55 = vld [vmem:[#allocation7 + $0x4a8] sm:$0xff]  ;;  %v626_v2 = vld [vmem:[#allocation7 + $0x8b8] sm:$0xff] }
  0xaa   :  { %1092 = vmatpush.msra.mxu2 %v524_v4  ;;  %1115 = vmatpush.msra.mxu3 %v588_v5  ;;  %vm320_vm10 = vcmp.eq.f32.partialorder %v2035_v9, %v2027_v7  ;;  %v352_v59 = vld [vmem:[#allocation7 + $0x28] sm:$0xff]  ;;  %v766_v39 = vld [vmem:[#allocation7 + $0xd18] sm:$0xff] }
  0xab   :  { %1665 = vmatmul.msk.f32.gmra.mxu2 %vm325_vm7, %v1875_v35  ;;  %1667 = vmatmul.msk.f32.gmra.mxu3 %vm326_vm8, %v1875_v35  ;;  %v416_v60 = vld [vmem:[#allocation7 + $0x228] sm:$0xff]  ;;  %v830_v3 = vld [vmem:[#allocation7 + $0xf18] sm:$0xff] }
  0xac   :  { %1050 = vmatpush.msra.mxu0 %v380_v10  ;;  %1073 = vmatpush.msra.mxu1 %v444_v11  ;;  %v492_v61 = vld [vmem:[#allocation7 + $0x488] sm:$0xff] }
  0xad   :  { %1093 = vmatpush.msra.mxu2 %v520_v12  ;;  %1116 = vmatpush.msra.mxu3 %v584_v13  ;;  %v556_v62 = vld [vmem:[#allocation7 + $0x688] sm:$0xff] }
  0xae   :  { %1668 = vmatmul.msk.f32.vlgmr.msrb.gmra.mxu0 %vm319_vm9, %v1875_v35  ;;  %1670 = vmatmul.msk.f32.vlgmr.msrb.gmra.mxu1 %vm320_vm10, %v1875_v35  ;;  %v348_v63 = vld [vmem:[#allocation7 + $0x8] sm:$0xff] }
  0xaf   :  { %1051 = vmatpush.msra.mxu0 %v376_v16  ;;  %1074 = vmatpush.msra.mxu1 %v440_v17  ;;  %v2061_v26 = vpop.f32.mrf.mxu2  ;;  %v552_v4 = vld [vmem:[#allocation7 + $0x668] sm:$0xff] }
  0xb0   :  { %v2063_v31 = vpop.f32.mrf.mxu3  ;;  %1094 = vmatpush.msra.mxu2 %v516_v18  ;;  %1117 = vmatpush.msra.mxu3 %v580_v19  ;;  %vm321_vm11 = vcmp.eq.f32.partialorder %v2061_v26, %v2057_v22  ;;  %v2069_v37 = vpop.f32.mrf.mxu0  ;;  %v664_v5 = vld [vmem:[#allocation7 + $0x9e8] sm:$0xff] }
  0xb1   :  { %1052 = vmatpush.msra.mxu0 %v372_v20  ;;  %1075 = vmatpush.msra.mxu1 %v436_v21  ;;  %vm322_vm12 = vcmp.eq.f32.partialorder %v2063_v31, %v2059_v23  ;;  %v2071_v40 = vpop.f32.mrf.mxu1  ;;  %vm327_vm13 = vcmp.eq.f32.partialorder %v2069_v37, %v2025_v6  ;;  %v728_v10 = vld [vmem:[#allocation7 + $0xbe8] sm:$0xff] }
  0xb2   :  { %1095 = vmatpush.msra.mxu2 %v512_v24  ;;  %1118 = vmatpush.msra.mxu3 %v576_v25  ;;  %vm328_vm14 = vcmp.eq.f32.partialorder %v2071_v40, %v2027_v7  ;;  %v484_v11 = vld [vmem:[#allocation7 + $0x448] sm:$0xff] }
  0xb3   :  { %1053 = vmatpush.msra.mxu0 %v368_v32  ;;  %1076 = vmatpush.msra.mxu1 %v432_v33  ;;  %v548_v12 = vld [vmem:[#allocation7 + $0x648] sm:$0xff] }
  0xb4   :  { %1096 = vmatpush.msra.mxu2 %v508_v34  ;;  %1119 = vmatpush.msra.mxu3 %v572_v36  ;;  %v660_v13 = vld [vmem:[#allocation7 + $0x9c8] sm:$0xff] }
  0xb5   :  { %1672 = vmatmul.msk.f32.vlgmr.msrb.gmra.mxu2 %vm321_vm11, %v1875_v35  ;;  %1674 = vmatmul.msk.f32.vlgmr.msrb.gmra.mxu3 %vm322_vm12, %v1875_v35  ;;  %v544_v16 = vld [vmem:[#allocation7 + $0x628] sm:$0xff] }
  0xb6   :  { %1054 = vmatpush.msra.mxu0 %v364_v41  ;;  %1077 = vmatpush.msra.mxu1 %v428_v44  ;;  %v656_v17 = vld [vmem:[#allocation7 + $0x9a8] sm:$0xff] }
  0xb7   :  { %1097 = vmatpush.msra.mxu2 %v504_v45  ;;  %1120 = vmatpush.msra.mxu3 %v568_v46  ;;  %v720_v18 = vld [vmem:[#allocation7 + $0xba8] sm:$0xff] }
  0xb8   :  { %1669 = vmatmul.msk.f32.gmra.mxu0 %vm327_vm13, %v1875_v35  ;;  %1671 = vmatmul.msk.f32.gmra.mxu1 %vm328_vm14, %v1875_v35  ;;  %v2093_v57 = vpop.f32.mrf.mxu2  ;;  %v476_v19 = vld [vmem:[#allocation7 + $0x408] sm:$0xff] }
  0xb9   :  { %1055 = vmatpush.msra.mxu0 %v360_v47  ;;  %1078 = vmatpush.msra.mxu1 %v424_v50  ;;  %v2095_v58 = vpop.f32.mrf.mxu3  ;;  %vm329_vm15 = vcmp.eq.f32.partialorder %v2093_v57, %v2057_v22  ;;  %v540_v20 = vld [vmem:[#allocation7 + $0x608] sm:$0xff] }
  0xba   :  { %1098 = vmatpush.msra.mxu2 %v500_v51  ;;  %1121 = vmatpush.msra.mxu3 %v564_v52  ;;  %vm330_vm0 = vcmp.eq.f32.partialorder %v2095_v58, %v2059_v23  ;;  %v652_v21 = vld [vmem:[#allocation7 + $0x988] sm:$0xff] }
  0xbb   :  { %1056 = vmatpush.msra.mxu0 %v356_v53  ;;  %1079 = vmatpush.msra.mxu1 %v420_v54  ;;  %v716_v24 = vld [vmem:[#allocation7 + $0xb88] sm:$0xff] }
  0xbc   :  { %1099 = vmatpush.msra.mxu2 %v496_v55  ;;  %1122 = vmatpush.msra.mxu3 %v560_v56  ;;  %v792_v25 = vld [vmem:[#allocation7 + $0xde8] sm:$0xff] }
  0xbd   :  { %1057 = vmatpush.msra.mxu0 %v352_v59  ;;  %1080 = vmatpush.msra.mxu1 %v416_v60  ;;  %v856_v32 = vld [vmem:[#allocation7 + $0xfe8] sm:$0xff] }
  0xbe   :  { %1100 = vmatpush.msra.mxu2 %v492_v61  ;;  %1123 = vmatpush.msra.mxu3 %v556_v62  ;;  %v648_v33 = vld [vmem:[#allocation7 + $0x968] sm:$0xff] }
  0xbf   :  { %1673 = vmatmul.msk.f32.gmra.mxu2 %vm329_vm15, %v1875_v35  ;;  %1675 = vmatmul.msk.f32.gmra.mxu3 %vm330_vm0, %v1875_v35  ;;  %v712_v34 = vld [vmem:[#allocation7 + $0xb68] sm:$0xff] }
  0xc0   :  { %1058 = vmatpush.msra.mxu0 %v348_v63  ;;  %1081 = vmatpush.msra.mxu1 %v412_v0  ;;  %v788_v36 = vld [vmem:[#allocation7 + $0xdc8] sm:$0xff] }
  0xc1   :  { %1101 = vmatpush.msra.mxu2 %v488_v1  ;;  %1124 = vmatpush.msra.mxu3 %v552_v4  ;;  %v852_v41 = vld [vmem:[#allocation7 + $0xfc8] sm:$0xff] }
  0xc2   :  { %1135 = vmatpush.msrb.mxu0 %v664_v5  ;;  %1158 = vmatpush.msrb.mxu1 %v728_v10  ;;  %v644_v44 = vld [vmem:[#allocation7 + $0x948] sm:$0xff] }
  0xc3   :  { %1676 = vmatmul.msk.f32.vlgmr.msra.gmra.mxu0 %vm315_vm1, %v1875_v35  ;;  %1678 = vmatmul.msk.f32.vlgmr.msra.gmra.mxu1 %vm316_vm2, %v1875_v35  ;;  %v708_v45 = vld [vmem:[#allocation7 + $0xb48] sm:$0xff] }
  0xc4   :  { %1102 = vmatpush.msra.mxu2 %v484_v11  ;;  %1125 = vmatpush.msra.mxu3 %v548_v12  ;;  %v784_v46 = vld [vmem:[#allocation7 + $0xda8] sm:$0xff] }
  0xc5   :  { %1136 = vmatpush.msrb.mxu0 %v660_v13  ;;  %1159 = vmatpush.msrb.mxu1 %v724_v14  ;;  %v848_v47 = vld [vmem:[#allocation7 + $0xfa8] sm:$0xff] }
  0xc6   :  { %1103 = vmatpush.msra.mxu2 %v480_v15  ;;  %1126 = vmatpush.msra.mxu3 %v544_v16  ;;  %v640_v50 = vld [vmem:[#allocation7 + $0x928] sm:$0xff] }
  0xc7   :  { %1137 = vmatpush.msrb.mxu0 %v656_v17  ;;  %1160 = vmatpush.msrb.mxu1 %v720_v18  ;;  %v704_v51 = vld [vmem:[#allocation7 + $0xb28] sm:$0xff] }
  0xc8   :  { %1104 = vmatpush.msra.mxu2 %v476_v19  ;;  %1127 = vmatpush.msra.mxu3 %v540_v20  ;;  %v780_v52 = vld [vmem:[#allocation7 + $0xd88] sm:$0xff] }
  0xc9   :  { %1138 = vmatpush.msrb.mxu0 %v652_v21  ;;  %1161 = vmatpush.msrb.mxu1 %v716_v24  ;;  %v844_v53 = vld [vmem:[#allocation7 + $0xf88] sm:$0xff] }
  0xca   :  { %1181 = vmatpush.msrb.mxu2 %v792_v25  ;;  %1204 = vmatpush.msrb.mxu3 %v856_v32  ;;  %v636_v54 = vld [vmem:[#allocation7 + $0x908] sm:$0xff] }
  0xcb   :  { %1680 = vmatmul.msk.f32.vlgmr.msra.gmra.mxu2 %vm317_vm3, %v1875_v35  ;;  %1682 = vmatmul.msk.f32.vlgmr.msra.gmra.mxu3 %vm318_vm4, %v1875_v35  ;;  %v700_v55 = vld [vmem:[#allocation7 + $0xb08] sm:$0xff] }
  0xcc   :  { %1139 = vmatpush.msrb.mxu0 %v648_v33  ;;  %1162 = vmatpush.msrb.mxu1 %v712_v34  ;;  %v776_v56 = vld [vmem:[#allocation7 + $0xd68] sm:$0xff] }
  0xcd   :  { %1182 = vmatpush.msrb.mxu2 %v788_v36  ;;  %1205 = vmatpush.msrb.mxu3 %v852_v41  ;;  %v840_v59 = vld [vmem:[#allocation7 + $0xf68] sm:$0xff] }
  0xce   :  { %1677 = vmatmul.msk.f32.gmra.mxu0 %vm323_vm5, %v1875_v35  ;;  %1679 = vmatmul.msk.f32.gmra.mxu1 %vm324_vm6, %v1875_v35  ;;  %v632_v60 = vld [vmem:[#allocation7 + $0x8e8] sm:$0xff] }
  0xcf   :  { %1140 = vmatpush.msrb.mxu0 %v644_v44  ;;  %1163 = vmatpush.msrb.mxu1 %v708_v45  ;;  %v696_v61 = vld [vmem:[#allocation7 + $0xae8] sm:$0xff] }
  0xd0   :  { %1183 = vmatpush.msrb.mxu2 %v784_v46  ;;  %1206 = vmatpush.msrb.mxu3 %v848_v47  ;;  %v772_v62 = vld [vmem:[#allocation7 + $0xd48] sm:$0xff] }
  0xd1   :  { %1141 = vmatpush.msrb.mxu0 %v640_v50  ;;  %1164 = vmatpush.msrb.mxu1 %v704_v51  ;;  %v836_v63 = vld [vmem:[#allocation7 + $0xf48] sm:$0xff]  ;;  %v409_v51 = vld [vmem:[#allocation7 + $0x1f0] sm:$0xff] }
  0xd2   :  { %1184 = vmatpush.msrb.mxu2 %v780_v52  ;;  %1207 = vmatpush.msrb.mxu3 %v844_v53  ;;  %v628_v0 = vld [vmem:[#allocation7 + $0x8c8] sm:$0xff]  ;;  %v473_v52 = vld [vmem:[#allocation7 + $0x3f0] sm:$0xff] }
  0xd3   :  { %1142 = vmatpush.msrb.mxu0 %v636_v54  ;;  %1165 = vmatpush.msrb.mxu1 %v700_v55  ;;  %v692_v1 = vld [vmem:[#allocation7 + $0xac8] sm:$0xff]  ;;  %v405_v55 = vld [vmem:[#allocation7 + $0x1d0] sm:$0xff] }
  0xd4   :  { %1185 = vmatpush.msrb.mxu2 %v776_v56  ;;  %1208 = vmatpush.msrb.mxu3 %v840_v59  ;;  %v768_v4 = vld [vmem:[#allocation7 + $0xd28] sm:$0xff]  ;;  %v469_v56 = vld [vmem:[#allocation7 + $0x3d0] sm:$0xff] }
  0xd5   :  { %1681 = vmatmul.msk.f32.gmra.mxu2 %vm325_vm7, %v1875_v35  ;;  %1683 = vmatmul.msk.f32.gmra.mxu3 %vm326_vm8, %v1875_v35  ;;  %v832_v5 = vld [vmem:[#allocation7 + $0xf28] sm:$0xff] }
  0xd6   :  { %1143 = vmatpush.msrb.mxu0 %v632_v60  ;;  %1166 = vmatpush.msrb.mxu1 %v696_v61  ;;  %v624_v10 = vld [vmem:[#allocation7 + $0x8a8] sm:$0xff]  ;;  %v401_v61 = vld [vmem:[#allocation7 + $0x1b0] sm:$0xff] }
  0xd7   :  { %1186 = vmatpush.msrb.mxu2 %v772_v62  ;;  %1209 = vmatpush.msrb.mxu3 %v836_v63  ;;  %v688_v11 = vld [vmem:[#allocation7 + $0xaa8] sm:$0xff]  ;;  %v465_v62 = vld [vmem:[#allocation7 + $0x3b0] sm:$0xff] }
  0xd8   :  { %1144 = vmatpush.msrb.mxu0 %v628_v0  ;;  %1167 = vmatpush.msrb.mxu1 %v692_v1  ;;  %v764_v12 = vld [vmem:[#allocation7 + $0xd08] sm:$0xff]  ;;  %v397_v1 = vld [vmem:[#allocation7 + $0x190] sm:$0xff] }
  0xd9   :  { %v828_v13 = vld [vmem:[#allocation7 + $0xf08] sm:$0xff]  ;;  %1187 = vmatpush.msrb.mxu2 %v768_v4  ;;  %1210 = vmatpush.msrb.mxu3 %v832_v5  ;;  %v461_v4 = vld [vmem:[#allocation7 + $0x390] sm:$0xff] }
  0xda   :  { %v620_v14 = vld [vmem:[#allocation7 + $0x888] sm:$0xff]  ;;  %1145 = vmatpush.msrb.mxu0 %v624_v10  ;;  %1168 = vmatpush.msrb.mxu1 %v688_v11  ;;  %v537_v5 = vld [vmem:[#allocation7 + $0x5f0] sm:$0xff] }
  0xdb   :  { %v684_v15 = vld [vmem:[#allocation7 + $0xa88] sm:$0xff]  ;;  %1188 = vmatpush.msrb.mxu2 %v764_v12  ;;  %1211 = vmatpush.msrb.mxu3 %v828_v13  ;;  %v601_v10 = vld [vmem:[#allocation7 + $0x7f0] sm:$0xff] }
  0xdc   :  { %v760_v16 = vld [vmem:[#allocation7 + $0xce8] sm:$0xff]  ;;  %1146 = vmatpush.msrb.mxu0 %v620_v14  ;;  %1169 = vmatpush.msrb.mxu1 %v684_v15  ;;  %v393_v11 = vld [vmem:[#allocation7 + $0x170] sm:$0xff] }
  0xdd   :  { %v824_v17 = vld [vmem:[#allocation7 + $0xee8] sm:$0xff]  ;;  %1189 = vmatpush.msrb.mxu2 %v760_v16  ;;  %v457_v12 = vld [vmem:[#allocation7 + $0x370] sm:$0xff] }
  0xde   :  { %v616_v18 = vld [vmem:[#allocation7 + $0x868] sm:$0xff]  ;;  %1212 = vmatpush.msrb.mxu3 %v824_v17  ;;  %v533_v13 = vld [vmem:[#allocation7 + $0x5d0] sm:$0xff] }
  0xdf   :  { %v680_v19 = vld [vmem:[#allocation7 + $0xa68] sm:$0xff]  ;;  %1147 = vmatpush.msrb.mxu0 %v616_v18  ;;  %v597_v14 = vld [vmem:[#allocation7 + $0x7d0] sm:$0xff] }
  0xe0   :  { %v756_v20 = vld [vmem:[#allocation7 + $0xcc8] sm:$0xff]  ;;  %1170 = vmatpush.msrb.mxu1 %v680_v19  ;;  %v389_v15 = vld [vmem:[#allocation7 + $0x150] sm:$0xff] }
  0xe1   :  { %v820_v21 = vld [vmem:[#allocation7 + $0xec8] sm:$0xff]  ;;  %1190 = vmatpush.msrb.mxu2 %v756_v20  ;;  %v453_v16 = vld [vmem:[#allocation7 + $0x350] sm:$0xff] }
  0xe2   :  { %v612_v24 = vld [vmem:[#allocation7 + $0x848] sm:$0xff]  ;;  %1213 = vmatpush.msrb.mxu3 %v820_v21  ;;  %v529_v17 = vld [vmem:[#allocation7 + $0x5b0] sm:$0xff] }
  0xe3   :  { %v676_v25 = vld [vmem:[#allocation7 + $0xa48] sm:$0xff]  ;;  %1148 = vmatpush.msrb.mxu0 %v612_v24  ;;  %v593_v18 = vld [vmem:[#allocation7 + $0x7b0] sm:$0xff] }
  0xe4   :  { %v752_v32 = vld [vmem:[#allocation7 + $0xca8] sm:$0xff]  ;;  %1171 = vmatpush.msrb.mxu1 %v676_v25  ;;  %v385_v19 = vld [vmem:[#allocation7 + $0x130] sm:$0xff] }
  0xe5   :  { %v816_v33 = vld [vmem:[#allocation7 + $0xea8] sm:$0xff]  ;;  %1191 = vmatpush.msrb.mxu2 %v752_v32  ;;  %v449_v20 = vld [vmem:[#allocation7 + $0x330] sm:$0xff] }
  0xe6   :  { %v608_v34 = vld [vmem:[#allocation7 + $0x828] sm:$0xff]  ;;  %1214 = vmatpush.msrb.mxu3 %v816_v33  ;;  %v525_v21 = vld [vmem:[#allocation7 + $0x590] sm:$0xff] }
  0xe7   :  { %v672_v36 = vld [vmem:[#allocation7 + $0xa28] sm:$0xff]  ;;  %1149 = vmatpush.msrb.mxu0 %v608_v34  ;;  %v589_v24 = vld [vmem:[#allocation7 + $0x790] sm:$0xff] }
  0xe8   :  { %v748_v41 = vld [vmem:[#allocation7 + $0xc88] sm:$0xff]  ;;  %1172 = vmatpush.msrb.mxu1 %v672_v36  ;;  %v381_v25 = vld [vmem:[#allocation7 + $0x110] sm:$0xff] }
  0xe9   :  { %v812_v44 = vld [vmem:[#allocation7 + $0xe88] sm:$0xff]  ;;  %1192 = vmatpush.msrb.mxu2 %v748_v41  ;;  %v445_v32 = vld [vmem:[#allocation7 + $0x310] sm:$0xff] }
  0xea   :  { %v604_v45 = vld [vmem:[#allocation7 + $0x808] sm:$0xff]  ;;  %1215 = vmatpush.msrb.mxu3 %v812_v44  ;;  %v521_v33 = vld [vmem:[#allocation7 + $0x570] sm:$0xff] }
  0xeb   :  { %v668_v46 = vld [vmem:[#allocation7 + $0xa08] sm:$0xff]  ;;  %1150 = vmatpush.msrb.mxu0 %v604_v45  ;;  %v585_v34 = vld [vmem:[#allocation7 + $0x770] sm:$0xff] }
  0xec   :  { %v744_v47 = vld [vmem:[#allocation7 + $0xc68] sm:$0xff]  ;;  %1173 = vmatpush.msrb.mxu1 %v668_v46  ;;  %1684 = vmatmul.msk.f32.vlgmr.msrb.gmra.mxu0 %vm319_vm9, %v1875_v35  ;;  %v377_v36 = vld [vmem:[#allocation7 + $0xf0] sm:$0xff] }
  0xed   :  { %v808_v50 = vld [vmem:[#allocation7 + $0xe68] sm:$0xff]  ;;  %1193 = vmatpush.msrb.mxu2 %v744_v47  ;;  %1686 = vmatmul.msk.f32.vlgmr.msrb.gmra.mxu1 %vm320_vm10, %v1875_v35  ;;  %v441_v41 = vld [vmem:[#allocation7 + $0x2f0] sm:$0xff] }
  0xee   :  { %1216 = vmatpush.msrb.mxu3 %v808_v50  ;;  %v740_v53 = vld [vmem:[#allocation7 + $0xc48] sm:$0xff]  ;;  %1227 = vmatpush.msra.mxu0 %v409_v51  ;;  %v517_v44 = vld [vmem:[#allocation7 + $0x550] sm:$0xff] }
  0xef   :  { %v804_v54 = vld [vmem:[#allocation7 + $0xe48] sm:$0xff]  ;;  %1250 = vmatpush.msra.mxu1 %v473_v52  ;;  %1194 = vmatpush.msrb.mxu2 %v740_v53  ;;  %v581_v45 = vld [vmem:[#allocation7 + $0x750] sm:$0xff] }
  0xf0   :  { %v736_v59 = vld [vmem:[#allocation7 + $0xc28] sm:$0xff]  ;;  %1217 = vmatpush.msrb.mxu3 %v804_v54  ;;  %1228 = vmatpush.msra.mxu0 %v405_v55  ;;  %v373_v46 = vld [vmem:[#allocation7 + $0xd0] sm:$0xff] }
  0xf1   :  { %v800_v60 = vld [vmem:[#allocation7 + $0xe28] sm:$0xff]  ;;  %1251 = vmatpush.msra.mxu1 %v469_v56  ;;  %1195 = vmatpush.msrb.mxu2 %v736_v59  ;;  %v437_v47 = vld [vmem:[#allocation7 + $0x2d0] sm:$0xff] }
  0xf2   :  { %v732_v63 = vld [vmem:[#allocation7 + $0xc08] sm:$0xff]  ;;  %1218 = vmatpush.msrb.mxu3 %v800_v60  ;;  %1229 = vmatpush.msra.mxu0 %v401_v61  ;;  %v513_v50 = vld [vmem:[#allocation7 + $0x530] sm:$0xff] }
  0xf3   :  { %v796_v0 = vld [vmem:[#allocation7 + $0xe08] sm:$0xff]  ;;  %1252 = vmatpush.msra.mxu1 %v465_v62  ;;  %1196 = vmatpush.msrb.mxu2 %v732_v63  ;;  %v577_v51 = vld [vmem:[#allocation7 + $0x730] sm:$0xff] }
  0xf4   :  { %1219 = vmatpush.msrb.mxu3 %v796_v0  ;;  %1688 = vmatmul.msk.f32.vlgmr.msrb.gmra.mxu2 %vm321_vm11, %v1875_v35  ;;  %v369_v52 = vld [vmem:[#allocation7 + $0xb0] sm:$0xff] }
  0xf5   :  { %1690 = vmatmul.msk.f32.vlgmr.msrb.gmra.mxu3 %vm322_vm12, %v1875_v35  ;;  %1230 = vmatpush.msra.mxu0 %v397_v1  ;;  %v433_v53 = vld [vmem:[#allocation7 + $0x2b0] sm:$0xff] }
  0xf6   :  { %1253 = vmatpush.msra.mxu1 %v461_v4  ;;  %1273 = vmatpush.msra.mxu2 %v537_v5  ;;  %v509_v54 = vld [vmem:[#allocation7 + $0x510] sm:$0xff] }
  0xf7   :  { %1296 = vmatpush.msra.mxu3 %v601_v10  ;;  %1685 = vmatmul.msk.f32.gmra.mxu0 %vm327_vm13, %v1875_v35  ;;  %v573_v55 = vld [vmem:[#allocation7 + $0x710] sm:$0xff] }
  0xf8   :  { %1687 = vmatmul.msk.f32.gmra.mxu1 %vm328_vm14, %v1875_v35  ;;  %1231 = vmatpush.msra.mxu0 %v393_v11  ;;  %v365_v56 = vld [vmem:[#allocation7 + $0x90] sm:$0xff] }
  0xf9   :  { %1254 = vmatpush.msra.mxu1 %v457_v12  ;;  %1274 = vmatpush.msra.mxu2 %v533_v13  ;;  %v429_v59 = vld [vmem:[#allocation7 + $0x290] sm:$0xff] }
  0xfa   :  { %1297 = vmatpush.msra.mxu3 %v597_v14  ;;  %1232 = vmatpush.msra.mxu0 %v389_v15  ;;  %v505_v60 = vld [vmem:[#allocation7 + $0x4f0] sm:$0xff] }
  0xfb   :  { %1255 = vmatpush.msra.mxu1 %v453_v16  ;;  %1275 = vmatpush.msra.mxu2 %v529_v17  ;;  %v569_v61 = vld [vmem:[#allocation7 + $0x6f0] sm:$0xff] }
  0xfc   :  { %1298 = vmatpush.msra.mxu3 %v593_v18  ;;  %1233 = vmatpush.msra.mxu0 %v385_v19  ;;  %v361_v62 = vld [vmem:[#allocation7 + $0x70] sm:$0xff] }
  0xfd   :  { %1256 = vmatpush.msra.mxu1 %v449_v20  ;;  %1276 = vmatpush.msra.mxu2 %v525_v21  ;;  %v425_v63 = vld [vmem:[#allocation7 + $0x270] sm:$0xff] }
  0xfe   :  { %1299 = vmatpush.msra.mxu3 %v589_v24  ;;  %1689 = vmatmul.msk.f32.gmra.mxu2 %vm329_vm15, %v1875_v35  ;;  %v501_v0 = vld [vmem:[#allocation7 + $0x4d0] sm:$0xff] }
  0xff   :  { %1691 = vmatmul.msk.f32.gmra.mxu3 %vm330_vm0, %v1875_v35  ;;  %1234 = vmatpush.msra.mxu0 %v381_v25  ;;  %v565_v1 = vld [vmem:[#allocation7 + $0x6d0] sm:$0xff] }
 0x100   :  { %1257 = vmatpush.msra.mxu1 %v445_v32  ;;  %1277 = vmatpush.msra.mxu2 %v521_v33  ;;  %v357_v4 = vld [vmem:[#allocation7 + $0x50] sm:$0xff] }
 0x101   :  { %1300 = vmatpush.msra.mxu3 %v585_v34  ;;  %1235 = vmatpush.msra.mxu0 %v377_v36  ;;  %v421_v5 = vld [vmem:[#allocation7 + $0x250] sm:$0xff] }
 0x102   :  { %1258 = vmatpush.msra.mxu1 %v441_v41  ;;  %1278 = vmatpush.msra.mxu2 %v517_v44  ;;  %v497_v10 = vld [vmem:[#allocation7 + $0x4b0] sm:$0xff] }
 0x103   :  { %1301 = vmatpush.msra.mxu3 %v581_v45  ;;  %1236 = vmatpush.msra.mxu0 %v373_v46  ;;  %v561_v11 = vld [vmem:[#allocation7 + $0x6b0] sm:$0xff] }
 0x104   :  { %1259 = vmatpush.msra.mxu1 %v437_v47  ;;  %1279 = vmatpush.msra.mxu2 %v513_v50  ;;  %v353_v12 = vld [vmem:[#allocation7 + $0x30] sm:$0xff] }
 0x105   :  { %1302 = vmatpush.msra.mxu3 %v577_v51  ;;  %1237 = vmatpush.msra.mxu0 %v369_v52  ;;  %v417_v13 = vld [vmem:[#allocation7 + $0x230] sm:$0xff] }
 0x106   :  { %1260 = vmatpush.msra.mxu1 %v433_v53  ;;  %1280 = vmatpush.msra.mxu2 %v509_v54  ;;  %v493_v14 = vld [vmem:[#allocation7 + $0x490] sm:$0xff] }
 0x107   :  { %1303 = vmatpush.msra.mxu3 %v573_v55  ;;  %1238 = vmatpush.msra.mxu0 %v365_v56  ;;  %v557_v15 = vld [vmem:[#allocation7 + $0x690] sm:$0xff] }
 0x108   :  { %1261 = vmatpush.msra.mxu1 %v429_v59  ;;  %1281 = vmatpush.msra.mxu2 %v505_v60  ;;  %v349_v16 = vld [vmem:[#allocation7 + $0x10] sm:$0xff] }
 0x109   :  { %1304 = vmatpush.msra.mxu3 %v569_v61  ;;  %1239 = vmatpush.msra.mxu0 %v361_v62  ;;  %v413_v17 = vld [vmem:[#allocation7 + $0x210] sm:$0xff] }
 0x10a   :  { %1262 = vmatpush.msra.mxu1 %v425_v63  ;;  %1282 = vmatpush.msra.mxu2 %v501_v0  ;;  %v489_v18 = vld [vmem:[#allocation7 + $0x470] sm:$0xff] }
 0x10b   :  { %1305 = vmatpush.msra.mxu3 %v565_v1  ;;  %1240 = vmatpush.msra.mxu0 %v357_v4  ;;  %v553_v19 = vld [vmem:[#allocation7 + $0x670] sm:$0xff] }
 0x10c   :  { %1263 = vmatpush.msra.mxu1 %v421_v5  ;;  %1283 = vmatpush.msra.mxu2 %v497_v10  ;;  %v665_v20 = vld [vmem:[#allocation7 + $0x9f0] sm:$0xff] }
 0x10d   :  { %1306 = vmatpush.msra.mxu3 %v561_v11  ;;  %1241 = vmatpush.msra.mxu0 %v353_v12  ;;  %v729_v21 = vld [vmem:[#allocation7 + $0xbf0] sm:$0xff] }
 0x10e   :  { %1264 = vmatpush.msra.mxu1 %v417_v13  ;;  %1284 = vmatpush.msra.mxu2 %v493_v14  ;;  %v485_v24 = vld [vmem:[#allocation7 + $0x450] sm:$0xff] }
 0x10f   :  { %1307 = vmatpush.msra.mxu3 %v557_v15  ;;  %1242 = vmatpush.msra.mxu0 %v349_v16  ;;  %v549_v25 = vld [vmem:[#allocation7 + $0x650] sm:$0xff] }
 0x110   :  { %1265 = vmatpush.msra.mxu1 %v413_v17  ;;  %1285 = vmatpush.msra.mxu2 %v489_v18  ;;  %v661_v32 = vld [vmem:[#allocation7 + $0x9d0] sm:$0xff] }
 0x111   :  { %1308 = vmatpush.msra.mxu3 %v553_v19  ;;  %1692 = vmatmul.msk.f32.vlgmr.msra.gmra.mxu0 %vm315_vm1, %v1875_v35  ;;  %v725_v33 = vld [vmem:[#allocation7 + $0xbd0] sm:$0xff] }
 0x112   :  { %1694 = vmatmul.msk.f32.vlgmr.msra.gmra.mxu1 %vm316_vm2, %v1875_v35  ;;  %1319 = vmatpush.msrb.mxu0 %v665_v20  ;;  %v481_v34 = vld [vmem:[#allocation7 + $0x430] sm:$0xff] }
 0x113   :  { %1342 = vmatpush.msrb.mxu1 %v729_v21  ;;  %v545_v36 = vld [vmem:[#allocation7 + $0x630] sm:$0xff]  ;;  %1286 = vmatpush.msra.mxu2 %v485_v24 }
 0x114   :  { %1309 = vmatpush.msra.mxu3 %v549_v25  ;;  %v657_v41 = vld [vmem:[#allocation7 + $0x9b0] sm:$0xff]  ;;  %1320 = vmatpush.msrb.mxu0 %v661_v32 }
 0x115   :  { %v721_v44 = vld [vmem:[#allocation7 + $0xbb0] sm:$0xff]  ;;  %1343 = vmatpush.msrb.mxu1 %v725_v33  ;;  %1287 = vmatpush.msra.mxu2 %v481_v34 }
 0x116   :  { %v477_v45 = vld [vmem:[#allocation7 + $0x410] sm:$0xff]  ;;  %1310 = vmatpush.msra.mxu3 %v545_v36  ;;  %1321 = vmatpush.msrb.mxu0 %v657_v41 }
 0x117   :  { %v541_v46 = vld [vmem:[#allocation7 + $0x610] sm:$0xff]  ;;  %1344 = vmatpush.msrb.mxu1 %v721_v44  ;;  %1288 = vmatpush.msra.mxu2 %v477_v45  ;;  %v876_v5 = vpop.f32.mrf.mxu0 }
 0x118   :  { %v653_v47 = vld [vmem:[#allocation7 + $0x990] sm:$0xff]  ;;  %1311 = vmatpush.msra.mxu3 %v541_v46  ;;  %1696 = vmatmul.msk.f32.vlgmr.msra.gmra.mxu2 %vm317_vm3, %v1875_v35  ;;  %v899_v10 = vpop.f32.mrf.mxu1 }
 0x119   :  { %v717_v50 = vld [vmem:[#allocation7 + $0xb90] sm:$0xff]  ;;  %1698 = vmatmul.msk.f32.vlgmr.msra.gmra.mxu3 %vm318_vm4, %v1875_v35  ;;  %1322 = vmatpush.msrb.mxu0 %v653_v47  ;;  %v900_v11 = vadd.f32 %v899_v10, %v876_v5 }
 0x11a   :  { %v793_v51 = vld [vmem:[#allocation7 + $0xdf0] sm:$0xff]  ;;  %1345 = vmatpush.msrb.mxu1 %v717_v50  ;;  %1693 = vmatmul.msk.f32.gmra.mxu0 %vm323_vm5, %v1875_v35 }
 0x11b   :  { %v857_v52 = vld [vmem:[#allocation7 + $0xff0] sm:$0xff]  ;;  %1365 = vmatpush.msrb.mxu2 %v793_v51  ;;  %1695 = vmatmul.msk.f32.gmra.mxu1 %vm324_vm6, %v1875_v35 }
 0x11c   :  { %v649_v53 = vld [vmem:[#allocation7 + $0x970] sm:$0xff]  ;;  %1388 = vmatpush.msrb.mxu3 %v857_v52 }
 0x11d   :  { %v713_v54 = vld [vmem:[#allocation7 + $0xb70] sm:$0xff]  ;;  %1323 = vmatpush.msrb.mxu0 %v649_v53 }
 0x11e   :  { %v789_v55 = vld [vmem:[#allocation7 + $0xdd0] sm:$0xff]  ;;  %1346 = vmatpush.msrb.mxu1 %v713_v54 }
 0x11f   :  { %v853_v56 = vld [vmem:[#allocation7 + $0xfd0] sm:$0xff]  ;;  %1366 = vmatpush.msrb.mxu2 %v789_v55 }
 0x120   :  { %v645_v59 = vld [vmem:[#allocation7 + $0x950] sm:$0xff]  ;;  %1389 = vmatpush.msrb.mxu3 %v853_v56  ;;  %1697 = vmatmul.msk.f32.gmra.mxu2 %vm325_vm7, %v1875_v35 }
 0x121   :  { %v709_v60 = vld [vmem:[#allocation7 + $0xb50] sm:$0xff]  ;;  %1324 = vmatpush.msrb.mxu0 %v645_v59  ;;  %1699 = vmatmul.msk.f32.gmra.mxu3 %vm326_vm8, %v1875_v35  ;;  %v879_v45 = vpop.f32.mrf.mxu0  ;;  %v902_v46 = vpop.f32.mrf.mxu1 }
 0x122   :  { %v785_v61 = vld [vmem:[#allocation7 + $0xdb0] sm:$0xff]  ;;  %1347 = vmatpush.msrb.mxu1 %v709_v60  ;;  %v903_v51 = vadd.f32 %v902_v46, %v879_v45  ;;  %v402_v45 = vld [vmem:[#allocation7 + $0x1b8] sm:$0xff] }
 0x123   :  { %v849_v62 = vld [vmem:[#allocation7 + $0xfb0] sm:$0xff]  ;;  %1367 = vmatpush.msrb.mxu2 %v785_v61  ;;  %v466_v46 = vld [vmem:[#allocation7 + $0x3b8] sm:$0xff] }
 0x124   :  { %v641_v63 = vld [vmem:[#allocation7 + $0x930] sm:$0xff]  ;;  %1390 = vmatpush.msrb.mxu3 %v849_v62  ;;  %v922_v56 = vpop.f32.mrf.mxu2 }
 0x125   :  { %v705_v0 = vld [vmem:[#allocation7 + $0xb30] sm:$0xff]  ;;  %1325 = vmatpush.msrb.mxu0 %v641_v63  ;;  %v923_v61 = vadd.f32 %v922_v56, %v900_v11  ;;  %v538_v56 = vld [vmem:[#allocation7 + $0x5f8] sm:$0xff] }
 0x126   :  { %v781_v1 = vld [vmem:[#allocation7 + $0xd90] sm:$0xff]  ;;  %1348 = vmatpush.msrb.mxu1 %v705_v0  ;;  %v945_v0 = vpop.f32.mrf.mxu3 }
 0x127   :  { %v845_v4 = vld [vmem:[#allocation7 + $0xf90] sm:$0xff]  ;;  %1368 = vmatpush.msrb.mxu2 %v781_v1  ;;  %v946_v5 = vadd.f32 %v945_v0, %v923_v61  ;;  %v458_v61 = vld [vmem:[#allocation7 + $0x378] sm:$0xff] }
 0x128   :  { %v637_v12 = vld [vmem:[#allocation7 + $0x910] sm:$0xff]  ;;  %1391 = vmatpush.msrb.mxu3 %v845_v4  ;;  %v534_v0 = vld [vmem:[#allocation7 + $0x5d8] sm:$0xff] }
 0x129   :  { %v701_v13 = vld [vmem:[#allocation7 + $0xb10] sm:$0xff]  ;;  %1326 = vmatpush.msrb.mxu0 %v637_v12 }
 0x12a   :  { %v777_v14 = vld [vmem:[#allocation7 + $0xd70] sm:$0xff]  ;;  %1349 = vmatpush.msrb.mxu1 %v701_v13 }
 0x12b   :  { %v841_v15 = vld [vmem:[#allocation7 + $0xf70] sm:$0xff]  ;;  %1369 = vmatpush.msrb.mxu2 %v777_v14 }
 0x12c   :  { %v633_v16 = vld [vmem:[#allocation7 + $0x8f0] sm:$0xff]  ;;  %1392 = vmatpush.msrb.mxu3 %v841_v15 }
 0x12d   :  { %v697_v17 = vld [vmem:[#allocation7 + $0xaf0] sm:$0xff]  ;;  %1327 = vmatpush.msrb.mxu0 %v633_v16  ;;  %v968_v16 = vpop.f32.mrf.mxu0 }
 0x12e   :  { %v773_v18 = vld [vmem:[#allocation7 + $0xd50] sm:$0xff]  ;;  %1350 = vmatpush.msrb.mxu1 %v697_v17  ;;  %v410_v17 = vld [vmem:[#allocation7 + $0x1f8] sm:$0xff] }
 0x12f   :  { %v837_v19 = vld [vmem:[#allocation7 + $0xf50] sm:$0xff]  ;;  %1370 = vmatpush.msrb.mxu2 %v773_v18  ;;  %v474_v18 = vld [vmem:[#allocation7 + $0x3f8] sm:$0xff] }
 0x130   :  { %v629_v20 = vld [vmem:[#allocation7 + $0x8d0] sm:$0xff]  ;;  %1393 = vmatpush.msrb.mxu3 %v837_v19  ;;  %v969_v19 = vadd.f32 %v968_v16, %v946_v5  ;;  %v454_v5 = vld [vmem:[#allocation7 + $0x358] sm:$0xff] }
 0x131   :  { %v693_v21 = vld [vmem:[#allocation7 + $0xad0] sm:$0xff]  ;;  %1328 = vmatpush.msrb.mxu0 %v629_v20  ;;  %v991_v20 = vpop.f32.mrf.mxu1  ;;  %v450_v16 = vld [vmem:[#allocation7 + $0x338] sm:$0xff] }
 0x132   :  { %v769_v24 = vld [vmem:[#allocation7 + $0xd30] sm:$0xff]  ;;  %1351 = vmatpush.msrb.mxu1 %v693_v21 }
 0x133   :  { %v833_v25 = vld [vmem:[#allocation7 + $0xf30] sm:$0xff]  ;;  %1371 = vmatpush.msrb.mxu2 %v769_v24 }
 0x134   :  { %v625_v32 = vld [vmem:[#allocation7 + $0x8b0] sm:$0xff]  ;;  %1394 = vmatpush.msrb.mxu3 %v833_v25  ;;  %v406_v25 = vld [vmem:[#allocation7 + $0x1d8] sm:$0xff] }
 0x135   :  { %v689_v33 = vld [vmem:[#allocation7 + $0xab0] sm:$0xff]  ;;  %1329 = vmatpush.msrb.mxu0 %v625_v32  ;;  %v470_v32 = vld [vmem:[#allocation7 + $0x3d8] sm:$0xff] }
 0x136   :  { %v765_v34 = vld [vmem:[#allocation7 + $0xd10] sm:$0xff]  ;;  %1352 = vmatpush.msrb.mxu1 %v689_v33  ;;  %v992_v33 = vadd.f32 %v991_v20, %v969_v19  ;;  %v590_v19 = vld [vmem:[#allocation7 + $0x798] sm:$0xff] }
 0x137   :  { %v829_v36 = vld [vmem:[#allocation7 + $0xf10] sm:$0xff]  ;;  %1372 = vmatpush.msrb.mxu2 %v765_v34  ;;  %v925_v34 = vpop.f32.mrf.mxu2 }
 0x138   :  { %v621_v41 = vld [vmem:[#allocation7 + $0x890] sm:$0xff]  ;;  %1395 = vmatpush.msrb.mxu3 %v829_v36 }
 0x139   :  { %v685_v44 = vld [vmem:[#allocation7 + $0xa90] sm:$0xff]  ;;  %1330 = vmatpush.msrb.mxu0 %v621_v41 }
 0x13a   :  { %v761_v47 = vld [vmem:[#allocation7 + $0xcf0] sm:$0xff]  ;;  %1353 = vmatpush.msrb.mxu1 %v685_v44  ;;  %v926_v44 = vadd.f32 %v925_v34, %v903_v51  ;;  %v602_v51 = vld [vmem:[#allocation7 + $0x7f8] sm:$0xff] }
 0x13b   :  { %v825_v50 = vld [vmem:[#allocation7 + $0xef0] sm:$0xff]  ;;  %1373 = vmatpush.msrb.mxu2 %v761_v47  ;;  %v948_v47 = vpop.f32.mrf.mxu3  ;;  %v442_v34 = vld [vmem:[#allocation7 + $0x2f8] sm:$0xff] }
 0x13c   :  { %v617_v52 = vld [vmem:[#allocation7 + $0x870] sm:$0xff]  ;;  %1396 = vmatpush.msrb.mxu3 %v825_v50 }
 0x13d   :  { %v681_v53 = vld [vmem:[#allocation7 + $0xa70] sm:$0xff]  ;;  %1331 = vmatpush.msrb.mxu0 %v617_v52 }
 0x13e   :  { %v757_v54 = vld [vmem:[#allocation7 + $0xcd0] sm:$0xff]  ;;  %1354 = vmatpush.msrb.mxu1 %v681_v53  ;;  %v949_v53 = vadd.f32 %v948_v47, %v926_v44  ;;  %v438_v47 = vld [vmem:[#allocation7 + $0x2d8] sm:$0xff] }
 0x13f   :  { %v821_v55 = vld [vmem:[#allocation7 + $0xed0] sm:$0xff]  ;;  %1374 = vmatpush.msrb.mxu2 %v757_v54  ;;  %v398_v54 = vld [vmem:[#allocation7 + $0x198] sm:$0xff] }
 0x140   :  { %v613_v59 = vld [vmem:[#allocation7 + $0x850] sm:$0xff]  ;;  %1397 = vmatpush.msrb.mxu3 %v821_v55  ;;  %v462_v55 = vld [vmem:[#allocation7 + $0x398] sm:$0xff] }
 0x141   :  { %v677_v60 = vld [vmem:[#allocation7 + $0xa50] sm:$0xff]  ;;  %1332 = vmatpush.msrb.mxu0 %v613_v59  ;;  %v971_v59 = vpop.f32.mrf.mxu0 }
 0x142   :  { %v753_v62 = vld [vmem:[#allocation7 + $0xcb0] sm:$0xff]  ;;  %1355 = vmatpush.msrb.mxu1 %v677_v60  ;;  %v394_v60 = vld [vmem:[#allocation7 + $0x178] sm:$0xff] }
 0x143   :  { %v817_v63 = vld [vmem:[#allocation7 + $0xeb0] sm:$0xff]  ;;  %1375 = vmatpush.msrb.mxu2 %v753_v62  ;;  %v972_v62 = vadd.f32 %v971_v59, %v949_v53  ;;  %v578_v53 = vld [vmem:[#allocation7 + $0x738] sm:$0xff] }
 0x144   :  { %v609_v1 = vld [vmem:[#allocation7 + $0x830] sm:$0xff]  ;;  %1398 = vmatpush.msrb.mxu3 %v817_v63  ;;  %v994_v63 = vpop.f32.mrf.mxu1  ;;  %v510_v59 = vld [vmem:[#allocation7 + $0x518] sm:$0xff] }
 0x145   :  { %v673_v4 = vld [vmem:[#allocation7 + $0xa30] sm:$0xff]  ;;  %1333 = vmatpush.msrb.mxu0 %v609_v1  ;;  %v598_v1 = vld [vmem:[#allocation7 + $0x7d8] sm:$0xff] }
 0x146   :  { %v749_v10 = vld [vmem:[#allocation7 + $0xc90] sm:$0xff]  ;;  %1356 = vmatpush.msrb.mxu1 %v673_v4  ;;  %v390_v4 = vld [vmem:[#allocation7 + $0x158] sm:$0xff] }
 0x147   :  { %v813_v12 = vld [vmem:[#allocation7 + $0xe90] sm:$0xff]  ;;  %1376 = vmatpush.msrb.mxu2 %v749_v10  ;;  %v995_v10 = vadd.f32 %v994_v63, %v972_v62  ;;  %v366_v62 = vld [vmem:[#allocation7 + $0x98] sm:$0xff] }
 0x148   :  { %v605_v13 = vld [vmem:[#allocation7 + $0x810] sm:$0xff]  ;;  %1399 = vmatpush.msrb.mxu3 %v813_v12  ;;  %v1014_v12 = vpop.f32.mrf.mxu2  ;;  %v430_v63 = vld [vmem:[#allocation7 + $0x298] sm:$0xff] }
 0x149   :  { %v669_v14 = vld [vmem:[#allocation7 + $0xa10] sm:$0xff]  ;;  %1334 = vmatpush.msrb.mxu0 %v605_v13  ;;  %v530_v13 = vld [vmem:[#allocation7 + $0x5b8] sm:$0xff]  ;;  %v1060_v44 = vpop.f32.mrf.mxu0 }
 0x14a   :  { %v745_v11 = vld [vmem:[#allocation7 + $0xc70] sm:$0xff]  ;;  %1357 = vmatpush.msrb.mxu1 %v669_v14  ;;  %1700 = vmatmul.msk.f32.vlgmr.msrb.gmra.mxu0 %vm319_vm9, %v1875_v35  ;;  %v594_v14 = vld [vmem:[#allocation7 + $0x7b8] sm:$0xff] }
 0x14b   :  { %v809_v15 = vld [vmem:[#allocation7 + $0xe70] sm:$0xff]  ;;  %1377 = vmatpush.msrb.mxu2 %v745_v11  ;;  %1702 = vmatmul.msk.f32.vlgmr.msrb.gmra.mxu1 %vm320_vm10, %v1875_v35  ;;  %v1015_v11 = vadd.f32 %v1014_v12, %v992_v33  ;;  %v378_v33 = vld [vmem:[#allocation7 + $0xf8] sm:$0xff] }
 0x14c   :  { %1400 = vmatpush.msrb.mxu3 %v809_v15  ;;  %v741_v21 = vld [vmem:[#allocation7 + $0xc50] sm:$0xff]  ;;  %1411 = vmatpush.msra.mxu0 %v410_v17  ;;  %v386_v15 = vld [vmem:[#allocation7 + $0x138] sm:$0xff]  ;;  %v1037_v17 = vpop.f32.mrf.mxu3 }
 0x14d   :  { %v805_v24 = vld [vmem:[#allocation7 + $0xe50] sm:$0xff]  ;;  %1434 = vmatpush.msra.mxu1 %v474_v18  ;;  %1378 = vmatpush.msrb.mxu2 %v741_v21  ;;  %v526_v18 = vld [vmem:[#allocation7 + $0x598] sm:$0xff]  ;;  %v2229_v20 = vadd.f32 %v1037_v17, %v1015_v11 }
 0x14e   :  { %v737_v36 = vld [vmem:[#allocation7 + $0xc30] sm:$0xff]  ;;  %1401 = vmatpush.msrb.mxu3 %v805_v24  ;;  %1412 = vmatpush.msra.mxu0 %v406_v25  ;;  %v382_v21 = vld [vmem:[#allocation7 + $0x118] sm:$0xff] }
 0x14f   :  { %v801_v41 = vld [vmem:[#allocation7 + $0xe30] sm:$0xff]  ;;  %1435 = vmatpush.msra.mxu1 %v470_v32  ;;  %1379 = vmatpush.msrb.mxu2 %v737_v36  ;;  %v446_v24 = vld [vmem:[#allocation7 + $0x318] sm:$0xff] }
 0x150   :  { %v733_v50 = vld [vmem:[#allocation7 + $0xc10] sm:$0xff]  ;;  %1402 = vmatpush.msrb.mxu3 %v801_v41  ;;  %1413 = vmatpush.msra.mxu0 %v402_v45  ;;  %v522_v25 = vld [vmem:[#allocation7 + $0x578] sm:$0xff]  ;;  %v1083_v45 = vpop.f32.mrf.mxu1 }
 0x151   :  { %v797_v52 = vld [vmem:[#allocation7 + $0xe10] sm:$0xff]  ;;  %1436 = vmatpush.msra.mxu1 %v466_v46  ;;  %1380 = vmatpush.msrb.mxu2 %v733_v50  ;;  %v586_v32 = vld [vmem:[#allocation7 + $0x778] sm:$0xff]  ;;  %v2239_v50 = vadd.f32 %v1083_v45, %v1060_v44 }
 0x152   :  { %1403 = vmatpush.msrb.mxu3 %v797_v52  ;;  %1704 = vmatmul.msk.f32.vlgmr.msrb.gmra.mxu2 %vm321_vm11, %v1875_v35  ;;  %v518_v36 = vld [vmem:[#allocation7 + $0x558] sm:$0xff] }
 0x153   :  { %1706 = vmatmul.msk.f32.vlgmr.msrb.gmra.mxu3 %vm322_vm12, %v1875_v35  ;;  %1414 = vmatpush.msra.mxu0 %v398_v54  ;;  %v582_v41 = vld [vmem:[#allocation7 + $0x758] sm:$0xff]  ;;  %v1017_v54 = vpop.f32.mrf.mxu2 }
 0x154   :  { %1437 = vmatpush.msra.mxu1 %v462_v55  ;;  %1457 = vmatpush.msra.mxu2 %v538_v56  ;;  %v374_v46 = vld [vmem:[#allocation7 + $0xd8] sm:$0xff] }
 0x155   :  { %1480 = vmatpush.msra.mxu3 %v602_v51  ;;  %1701 = vmatmul.msk.f32.gmra.mxu0 %vm327_vm13, %v1875_v35  ;;  %v514_v52 = vld [vmem:[#allocation7 + $0x538] sm:$0xff]  ;;  %v1018_v51 = vadd.f32 %v1017_v54, %v995_v10 }
 0x156   :  { %1703 = vmatmul.msk.f32.gmra.mxu1 %vm328_vm14, %v1875_v35  ;;  %1415 = vmatpush.msra.mxu0 %v394_v60  ;;  %v370_v55 = vld [vmem:[#allocation7 + $0xb8] sm:$0xff] }
 0x157   :  { %1438 = vmatpush.msra.mxu1 %v458_v61  ;;  %1458 = vmatpush.msra.mxu2 %v534_v0  ;;  %v434_v56 = vld [vmem:[#allocation7 + $0x2b8] sm:$0xff]  ;;  %v1040_v61 = vpop.f32.mrf.mxu3 }
 0x158   :  { %1481 = vmatpush.msra.mxu3 %v598_v1  ;;  %1416 = vmatpush.msra.mxu0 %v390_v4  ;;  %v574_v60 = vld [vmem:[#allocation7 + $0x718] sm:$0xff]  ;;  %v2241_v0 = vadd.f32 %v1040_v61, %v1018_v51 }
 0x159   :  { %1439 = vmatpush.msra.mxu1 %v454_v5  ;;  %1459 = vmatpush.msra.mxu2 %v530_v13  ;;  %v506_v1 = vld [vmem:[#allocation7 + $0x4f8] sm:$0xff] }
 0x15a   :  { %1482 = vmatpush.msra.mxu3 %v594_v14  ;;  %1417 = vmatpush.msra.mxu0 %v386_v15  ;;  %v570_v4 = vld [vmem:[#allocation7 + $0x6f8] sm:$0xff] }
 0x15b   :  { %1440 = vmatpush.msra.mxu1 %v450_v16  ;;  %1460 = vmatpush.msra.mxu2 %v526_v18  ;;  %v362_v5 = vld [vmem:[#allocation7 + $0x78] sm:$0xff]  ;;  %v1106_v44 = vpop.f32.mrf.mxu2 }
 0x15c   :  { %1483 = vmatpush.msra.mxu3 %v590_v19  ;;  %1705 = vmatmul.msk.f32.gmra.mxu2 %vm329_vm15, %v1875_v35  ;;  %v426_v12 = vld [vmem:[#allocation7 + $0x278] sm:$0xff]  ;;  %v1063_v19 = vpop.f32.mrf.mxu0  ;;  %v1107_v45 = vadd.f32 %v1106_v44, %v2239_v50 }
 0x15d   :  { %1707 = vmatmul.msk.f32.gmra.mxu3 %vm330_vm0, %v1875_v35  ;;  %1418 = vmatpush.msra.mxu0 %v382_v21  ;;  %v502_v10 = vld [vmem:[#allocation7 + $0x4d8] sm:$0xff]  ;;  %v1086_v21 = vpop.f32.mrf.mxu1 }
 0x15e   :  { %1441 = vmatpush.msra.mxu1 %v446_v24  ;;  %1461 = vmatpush.msra.mxu2 %v522_v25  ;;  %v566_v13 = vld [vmem:[#allocation7 + $0x6d8] sm:$0xff] }
 0x15f   :  { %1484 = vmatpush.msra.mxu3 %v586_v32  ;;  %1419 = vmatpush.msra.mxu0 %v378_v33  ;;  %v358_v14 = vld [vmem:[#allocation7 + $0x58] sm:$0xff]  ;;  %v1087_v32 = vadd.f32 %v1086_v21, %v1063_v19 }
 0x160   :  { %1442 = vmatpush.msra.mxu1 %v442_v34  ;;  %1462 = vmatpush.msra.mxu2 %v518_v36  ;;  %v422_v11 = vld [vmem:[#allocation7 + $0x258] sm:$0xff] }
 0x161   :  { %1485 = vmatpush.msra.mxu3 %v582_v41  ;;  %1420 = vmatpush.msra.mxu0 %v374_v46  ;;  %v498_v15 = vld [vmem:[#allocation7 + $0x4b8] sm:$0xff] }
 0x162   :  { %1443 = vmatpush.msra.mxu1 %v438_v47  ;;  %1463 = vmatpush.msra.mxu2 %v514_v52  ;;  %v562_v16 = vld [vmem:[#allocation7 + $0x6b8] sm:$0xff]  ;;  %v1129_v52 = vpop.f32.mrf.mxu3 }
 0x163   :  { %1486 = vmatpush.msra.mxu3 %v578_v53  ;;  %1421 = vmatpush.msra.mxu0 %v370_v55  ;;  %v354_v17 = vld [vmem:[#allocation7 + $0x38] sm:$0xff]  ;;  %v2244_v55 = vadd.f32 %v1129_v52, %v1107_v45 }
 0x164   :  { %1444 = vmatpush.msra.mxu1 %v434_v56  ;;  %1464 = vmatpush.msra.mxu2 %v510_v59  ;;  %v418_v18 = vld [vmem:[#allocation7 + $0x238] sm:$0xff] }
 0x165   :  { %1487 = vmatpush.msra.mxu3 %v574_v60  ;;  %1422 = vmatpush.msra.mxu0 %v366_v62  ;;  %v494_v24 = vld [vmem:[#allocation7 + $0x498] sm:$0xff] }
 0x166   :  { %1445 = vmatpush.msra.mxu1 %v430_v63  ;;  %1465 = vmatpush.msra.mxu2 %v506_v1  ;;  %v558_v25 = vld [vmem:[#allocation7 + $0x698] sm:$0xff] }
 0x167   :  { %1488 = vmatpush.msra.mxu3 %v570_v4  ;;  %1423 = vmatpush.msra.mxu0 %v362_v5  ;;  %v350_v33 = vld [vmem:[#allocation7 + $0x18] sm:$0xff]  ;;  %v1109_v5 = vpop.f32.mrf.mxu2 }
 0x168   :  { %1446 = vmatpush.msra.mxu1 %v426_v12  ;;  %1466 = vmatpush.msra.mxu2 %v502_v10  ;;  %v414_v34 = vld [vmem:[#allocation7 + $0x218] sm:$0xff]  ;;  %v1110_v12 = vadd.f32 %v1109_v5, %v1087_v32 }
 0x169   :  { %1489 = vmatpush.msra.mxu3 %v566_v13  ;;  %1424 = vmatpush.msra.mxu0 %v358_v14  ;;  %v490_v36 = vld [vmem:[#allocation7 + $0x478] sm:$0xff] }
 0x16a   :  { %1447 = vmatpush.msra.mxu1 %v422_v11  ;;  %1467 = vmatpush.msra.mxu2 %v498_v15  ;;  %v554_v41 = vld [vmem:[#allocation7 + $0x678] sm:$0xff]  ;;  %v1132_v14 = vpop.f32.mrf.mxu3 }
 0x16b   :  { %1490 = vmatpush.msra.mxu3 %v562_v16  ;;  %1425 = vmatpush.msra.mxu0 %v354_v17  ;;  %v666_v46 = vld [vmem:[#allocation7 + $0x9f8] sm:$0xff]  ;;  %v2262_v16 = vadd.f32 %v1132_v14, %v1110_v12 }
 0x16c   :  { %1448 = vmatpush.msra.mxu1 %v418_v18  ;;  %1468 = vmatpush.msra.mxu2 %v494_v24  ;;  %v730_v47 = vld [vmem:[#allocation7 + $0xbf8] sm:$0xff] }
 0x16d   :  { %1491 = vmatpush.msra.mxu3 %v558_v25  ;;  %1426 = vmatpush.msra.mxu0 %v350_v33  ;;  %v486_v53 = vld [vmem:[#allocation7 + $0x458] sm:$0xff] }
 0x16e   :  { %1449 = vmatpush.msra.mxu1 %v414_v34  ;;  %1469 = vmatpush.msra.mxu2 %v490_v36  ;;  %v550_v54 = vld [vmem:[#allocation7 + $0x658] sm:$0xff] }
 0x16f   :  { %1492 = vmatpush.msra.mxu3 %v554_v41  ;;  %1708 = vmatmul.msk.f32.vlgmr.msra.gmra.mxu0 %vm315_vm1, %v1875_v35  ;;  %v662_v50 = vld [vmem:[#allocation7 + $0x9d8] sm:$0xff] }
 0x170   :  { %1710 = vmatmul.msk.f32.vlgmr.msra.gmra.mxu1 %vm316_vm2, %v1875_v35  ;;  %v726_v56 = vld [vmem:[#allocation7 + $0xbd8] sm:$0xff]  ;;  %1503 = vmatpush.msrb.mxu0 %v666_v46 }
 0x171   :  { %1526 = vmatpush.msrb.mxu1 %v730_v47  ;;  %v482_v51 = vld [vmem:[#allocation7 + $0x438] sm:$0xff]  ;;  %1470 = vmatpush.msra.mxu2 %v486_v53  ;;  %v1152_v47 = vpop.f32.mrf.mxu0 }
 0x172   :  { %v546_v59 = vld [vmem:[#allocation7 + $0x638] sm:$0xff]  ;;  %1493 = vmatpush.msra.mxu3 %v550_v54  ;;  %1504 = vmatpush.msrb.mxu0 %v662_v50 }
 0x173   :  { %v658_v60 = vld [vmem:[#allocation7 + $0x9b8] sm:$0xff]  ;;  %1527 = vmatpush.msrb.mxu1 %v726_v56  ;;  %1471 = vmatpush.msra.mxu2 %v482_v51 }
 0x174   :  { %v722_v61 = vld [vmem:[#allocation7 + $0xbb8] sm:$0xff]  ;;  %1494 = vmatpush.msra.mxu3 %v546_v59  ;;  %1505 = vmatpush.msrb.mxu0 %v658_v60  ;;  %v1153_v59 = vadd.f32 %v1152_v47, %v2244_v55 }
 0x175   :  { %v478_v62 = vld [vmem:[#allocation7 + $0x418] sm:$0xff]  ;;  %1528 = vmatpush.msrb.mxu1 %v722_v61 }
 0x176   :  { %v718_v63 = vld [vmem:[#allocation7 + $0xb98] sm:$0xff]  ;;  %1472 = vmatpush.msra.mxu2 %v478_v62  ;;  %1495 = vmatpush.msra.mxu3 %v542_v29 }
 0x177   :  { %v794_v1 = vld [vmem:[#allocation7 + $0xdf8] sm:$0xff]  ;;  %1712 = vmatmul.msk.f32.vlgmr.msra.gmra.mxu2 %vm317_vm3, %v1875_v35  ;;  %1714 = vmatmul.msk.f32.vlgmr.msra.gmra.mxu3 %vm318_vm4, %v1875_v35 }
 0x178   :  { %v858_v4 = vld [vmem:[#allocation7 + $0xff8] sm:$0xff]  ;;  %1506 = vmatpush.msrb.mxu0 %v654_v30  ;;  %1529 = vmatpush.msrb.mxu1 %v718_v63 }
 0x179   :  { %v650_v10 = vld [vmem:[#allocation7 + $0x978] sm:$0xff]  ;;  %1549 = vmatpush.msrb.mxu2 %v794_v1  ;;  %1572 = vmatpush.msrb.mxu3 %v858_v4  ;;  %v1175_v1 = vpop.f32.mrf.mxu1 }
 0x17a   :  { %v714_v13 = vld [vmem:[#allocation7 + $0xb78] sm:$0xff]  ;;  %1709 = vmatmul.msk.f32.gmra.mxu0 %vm323_vm5, %v1875_v35  ;;  %1711 = vmatmul.msk.f32.gmra.mxu1 %vm324_vm6, %v1875_v35  ;;  %v1176_v12 = vadd.f32 %v1175_v1, %v1153_v59 }
 0x17b   :  { %v790_v11 = vld [vmem:[#allocation7 + $0xdd8] sm:$0xff]  ;;  %1507 = vmatpush.msrb.mxu0 %v650_v10  ;;  %1530 = vmatpush.msrb.mxu1 %v714_v13  ;;  %v1198_v13 = vpop.f32.mrf.mxu2 }
 0x17c   :  { %v854_v15 = vld [vmem:[#allocation7 + $0xfd8] sm:$0xff]  ;;  %1550 = vmatpush.msrb.mxu2 %v790_v11 }
 0x17d   :  { %v786_v17 = vld [vmem:[#allocation7 + $0xdb8] sm:$0xff]  ;;  %1573 = vmatpush.msrb.mxu3 %v854_v15  ;;  %1508 = vmatpush.msrb.mxu0 %v646_v42  ;;  %v1199_v15 = vadd.f32 %v1198_v13, %v1176_v12 }
 0x17e   :  { %v850_v18 = vld [vmem:[#allocation7 + $0xfb8] sm:$0xff]  ;;  %1531 = vmatpush.msrb.mxu1 %v710_v43  ;;  %1551 = vmatpush.msrb.mxu2 %v786_v17  ;;  %v1155_v17 = vpop.f32.mrf.mxu0 }
 0x17f   :  { %v642_v19 = vld [vmem:[#allocation7 + $0x938] sm:$0xff]  ;;  %1574 = vmatpush.msrb.mxu3 %v850_v18  ;;  %1713 = vmatmul.msk.f32.gmra.mxu2 %vm325_vm7, %v1875_v35  ;;  %v1221_v18 = vpop.f32.mrf.mxu3 }
 0x180   :  { %v706_v21 = vld [vmem:[#allocation7 + $0xb38] sm:$0xff]  ;;  %1509 = vmatpush.msrb.mxu0 %v642_v19  ;;  %1715 = vmatmul.msk.f32.gmra.mxu3 %vm326_vm8, %v1875_v35  ;;  %v2281_v19 = vadd.f32 %v1221_v18, %v1199_v15 }
 0x181   :  { %v782_v24 = vld [vmem:[#allocation7 + $0xd98] sm:$0xff]  ;;  %1532 = vmatpush.msrb.mxu1 %v706_v21  ;;  %1575 = vmatpush.msrb.mxu3 %v846_v27  ;;  %v1156_v27 = vadd.f32 %v1155_v17, %v2262_v16  ;;  %v1178_v16 = vpop.f32.mrf.mxu1 }
 0x182   :  { %1552 = vmatpush.msrb.mxu2 %v782_v24  ;;  %v842_v25 = vld [vmem:[#allocation7 + $0xf78] sm:$0xff]  ;;  %1510 = vmatpush.msrb.mxu0 %v638_v28  ;;  %v1596_v28 = vmax.f32 %v2229_v20, %v2281_v19 }
 0x183   :  { %v634_v32 = vld [vmem:[#allocation7 + $0x8f8] sm:$0xff]  ;;  %1533 = vmatpush.msrb.mxu1 %v702_v48  ;;  %1576 = vmatpush.msrb.mxu3 %v842_v25 }
 0x184   :  { %v698_v33 = vld [vmem:[#allocation7 + $0xaf8] sm:$0xff]  ;;  %1553 = vmatpush.msrb.mxu2 %v778_v49  ;;  %1511 = vmatpush.msrb.mxu0 %v634_v32 }
 0x185   :  { %v774_v34 = vld [vmem:[#allocation7 + $0xd58] sm:$0xff]  ;;  %1534 = vmatpush.msrb.mxu1 %v698_v33  ;;  %v1179_v33 = vadd.f32 %v1178_v16, %v1156_v27 }
 0x186   :  { %v838_v36 = vld [vmem:[#allocation7 + $0xf58] sm:$0xff]  ;;  %1554 = vmatpush.msrb.mxu2 %v774_v34  ;;  %v1201_v34 = vpop.f32.mrf.mxu2 }
 0x187   :  { %v630_v41 = vld [vmem:[#allocation7 + $0x8d8] sm:$0xff]  ;;  %1577 = vmatpush.msrb.mxu3 %v838_v36  ;;  %v1202_v8 = vadd.f32 %v1201_v34, %v1179_v33  ;;  %v1224_v9 = vpop.f32.mrf.mxu3 }
 0x188   :  { %v694_v44 = vld [vmem:[#allocation7 + $0xad8] sm:$0xff]  ;;  %1512 = vmatpush.msrb.mxu0 %v630_v41 }
 0x189   :  { %v770_v45 = vld [vmem:[#allocation7 + $0xd38] sm:$0xff]  ;;  %1535 = vmatpush.msrb.mxu1 %v694_v44  ;;  %1578 = vmatpush.msrb.mxu3 %v834_v38  ;;  %v2302_v36 = vadd.f32 %v1224_v9, %v1202_v8 }
 0x18a   :  { %v690_v46 = vld [vmem:[#allocation7 + $0xab8] sm:$0xff]  ;;  %1555 = vmatpush.msrb.mxu2 %v770_v45  ;;  %1513 = vmatpush.msrb.mxu0 %v626_v2 }
 0x18b   :  { %v622_v52 = vld [vmem:[#allocation7 + $0x898] sm:$0xff]  ;;  %1536 = vmatpush.msrb.mxu1 %v690_v46  ;;  %1579 = vmatpush.msrb.mxu3 %v830_v3  ;;  %v1597_v26 = vmax.f32 %v2241_v0, %v2302_v36 }
 0x18c   :  { %v686_v53 = vld [vmem:[#allocation7 + $0xa98] sm:$0xff]  ;;  %1556 = vmatpush.msrb.mxu2 %v766_v39  ;;  %1514 = vmatpush.msrb.mxu0 %v622_v52 }
 0x18d   :  { %v762_v54 = vld [vmem:[#allocation7 + $0xcf8] sm:$0xff]  ;;  %1537 = vmatpush.msrb.mxu1 %v686_v53 }
 0x18e   :  { %v826_v50 = vld [vmem:[#allocation7 + $0xef8] sm:$0xff]  ;;  %1557 = vmatpush.msrb.mxu2 %v762_v54  ;;  %v1244_v6 = vpop.f32.mrf.mxu0 }
 0x18f   :  { %v618_v56 = vld [vmem:[#allocation7 + $0x878] sm:$0xff]  ;;  %1580 = vmatpush.msrb.mxu3 %v826_v50  ;;  %v1267_v31 = vpop.f32.mrf.mxu1 }
 0x190   :  { %v682_v51 = vld [vmem:[#allocation7 + $0xa78] sm:$0xff]  ;;  %1515 = vmatpush.msrb.mxu0 %v618_v56  ;;  %v1268_v23 = vadd.f32 %v1267_v31, %v1244_v6 }
 0x191   :  { %v758_v60 = vld [vmem:[#allocation7 + $0xcd8] sm:$0xff]  ;;  %1538 = vmatpush.msrb.mxu1 %v682_v51 }
 0x192   :  { %v822_v61 = vld [vmem:[#allocation7 + $0xed8] sm:$0xff]  ;;  %1558 = vmatpush.msrb.mxu2 %v758_v60 }
 0x193   :  { %v614_v62 = vld [vmem:[#allocation7 + $0x858] sm:$0xff]  ;;  %1581 = vmatpush.msrb.mxu3 %v822_v61 }
 0x194   :  { %v678_v29 = vld [vmem:[#allocation7 + $0xa58] sm:$0xff]  ;;  %1516 = vmatpush.msrb.mxu0 %v614_v62 }
 0x195   :  { %v754_v30 = vld [vmem:[#allocation7 + $0xcb8] sm:$0xff]  ;;  %1539 = vmatpush.msrb.mxu1 %v678_v29 }
 0x196   :  { %v818_v63 = vld [vmem:[#allocation7 + $0xeb8] sm:$0xff]  ;;  %1559 = vmatpush.msrb.mxu2 %v754_v30 }
 0x197   :  { %v610_v4 = vld [vmem:[#allocation7 + $0x838] sm:$0xff]  ;;  %1582 = vmatpush.msrb.mxu3 %v818_v63  ;;  %v1247_v37 = vpop.f32.mrf.mxu0 }
 0x198   :  { %v674_v5 = vld [vmem:[#allocation7 + $0xa38] sm:$0xff]  ;;  %1517 = vmatpush.msrb.mxu0 %v610_v4  ;;  %v1270_v7 = vpop.f32.mrf.mxu1 }
 0x199   :  { %v750_v55 = vld [vmem:[#allocation7 + $0xc98] sm:$0xff]  ;;  %1540 = vmatpush.msrb.mxu1 %v674_v5  ;;  %v1271_v60 = vadd.f32 %v1270_v7, %v1247_v37 }
 0x19a   :  { %v814_v10 = vld [vmem:[#allocation7 + $0xe98] sm:$0xff]  ;;  %1560 = vmatpush.msrb.mxu2 %v750_v55 }
 0x19b   :  { %v606_v14 = vld [vmem:[#allocation7 + $0x818] sm:$0xff]  ;;  %1583 = vmatpush.msrb.mxu3 %v814_v10  ;;  %v1290_v41 = vpop.f32.mrf.mxu2 }
 0x19c   :  { %v670_v11 = vld [vmem:[#allocation7 + $0xa18] sm:$0xff]  ;;  %1518 = vmatpush.msrb.mxu0 %v606_v14  ;;  %v1313_v44 = vpop.f32.mrf.mxu3  ;;  %v1291_v50 = vadd.f32 %v1290_v41, %v1268_v23 }
 0x19d   :  { %v746_v42 = vld [vmem:[#allocation7 + $0xc78] sm:$0xff]  ;;  %1541 = vmatpush.msrb.mxu1 %v670_v11  ;;  %1716 = vmatmul.msk.f32.vlgmr.msrb.gmra.mxu0 %vm319_vm9, %v1875_v35 }
 0x19e   :  { %v810_v43 = vld [vmem:[#allocation7 + $0xe78] sm:$0xff]  ;;  %1561 = vmatpush.msrb.mxu2 %v746_v42  ;;  %1718 = vmatmul.msk.f32.vlgmr.msrb.gmra.mxu1 %vm320_vm10, %v1875_v35  ;;  %v1314_v56 = vadd.f32 %v1313_v44, %v1291_v50 }
 0x19f   :  { %v742_v21 = vld [vmem:[#allocation7 + $0xc58] sm:$0xff]  ;;  %1584 = vmatpush.msrb.mxu3 %v810_v43 }
 0x1a0   :  { %v806_v24 = vld [vmem:[#allocation7 + $0xe58] sm:$0xff]  ;;  %1562 = vmatpush.msrb.mxu2 %v742_v21 }
 0x1a1   :  { %v738_v48 = vld [vmem:[#allocation7 + $0xc38] sm:$0xff]  ;;  %1585 = vmatpush.msrb.mxu3 %v806_v24 }
 0x1a2   :  { %v802_v49 = vld [vmem:[#allocation7 + $0xe38] sm:$0xff]  ;;  %1563 = vmatpush.msrb.mxu2 %v738_v48 }
 0x1a3   :  { %v734_v25 = vld [vmem:[#allocation7 + $0xc18] sm:$0xff]  ;;  %1586 = vmatpush.msrb.mxu3 %v802_v49  ;;  %v1293_v45 = vpop.f32.mrf.mxu2 }
 0x1a4   :  { %v798_v32 = vld [vmem:[#allocation7 + $0xe18] sm:$0xff]  ;;  %1564 = vmatpush.msrb.mxu2 %v734_v25  ;;  %v1316_v38 = vpop.f32.mrf.mxu3  ;;  %v1294_v30 = vadd.f32 %v1293_v45, %v1271_v60  ;;  %v1736_v45 = vld [vmem:[#allocation8] ss:$0 sm:$0xff] }
 0x1a5   :  { %1587 = vmatpush.msrb.mxu3 %v798_v32  ;;  %1720 = vmatmul.msk.f32.vlgmr.msrb.gmra.mxu2 %vm321_vm11, %v1875_v35 }
 0x1a6   :  { %1722 = vmatmul.msk.f32.vlgmr.msrb.gmra.mxu3 %vm322_vm12, %v1875_v35  ;;  %1717 = vmatmul.msk.f32.gmra.mxu0 %vm327_vm13, %v1875_v35  ;;  %v1317_v12 = vadd.f32 %v1316_v38, %v1294_v30 }
 0x1a7   :  { %1719 = vmatmul.msk.f32.gmra.mxu1 %vm328_vm14, %v1875_v35 }
 0x1ad   :  { %1721 = vmatmul.msk.f32.gmra.mxu2 %vm329_vm15, %v1875_v35 }
 0x1ae   :  { %1723 = vmatmul.msk.f32.gmra.mxu3 %vm330_vm0, %v1875_v35 }
 0x1c7   :  { %v1336_v40 = vpop.f32.mrf.mxu0 }
 0x1c8   :  { %v1359_v2 = vpop.f32.mrf.mxu1  ;;  %v1337_v61 = vadd.f32 %v1336_v40, %v1314_v56 }
 0x1ca   :  { %v1360_v4 = vadd.f32 %v1359_v2, %v1337_v61 }
 0x1d2   :  { %v1339_v46 = vpop.f32.mrf.mxu0 }
 0x1d3   :  { %v1362_v22 = vpop.f32.mrf.mxu1  ;;  %v1340_v11 = vadd.f32 %v1339_v46, %v1317_v12 }
 0x1d5   :  { %v1382_v39 = vpop.f32.mrf.mxu2  ;;  %v1363_v24 = vadd.f32 %v1362_v22, %v1340_v11 }
 0x1d6   :  { %v1405_v3 = vpop.f32.mrf.mxu3  ;;  %v1383_v55 = vadd.f32 %v1382_v39, %v1360_v4 }
 0x1d8   :  { %v1406_v42 = vadd.f32 %v1405_v3, %v1383_v55 }
 0x1da   :  { %v1598_v49 = vmax.f32 %v1596_v28, %v1406_v42 }
 0x1df   :  { %v1385_v47 = vpop.f32.mrf.mxu2 }
 0x1e0   :  { %v1408_v52 = vpop.f32.mrf.mxu3  ;;  %v1386_v25 = vadd.f32 %v1385_v47, %v1363_v24 }
 0x1e2   :  { %v1409_v8 = vadd.f32 %v1408_v52, %v1386_v25 }
 0x1e4   :  { %v1599_v41 = vmax.f32 %v1597_v26, %v1409_v8 }
 0x1ec   :  { %v1428_v57 = vpop.f32.mrf.mxu0 }
 0x1ed   :  { %v1451_v53 = vpop.f32.mrf.mxu1 }
 0x1ee   :  { %v1452_v51 = vadd.f32 %v1451_v53, %v1428_v57 }
 0x1f7   :  { %v1431_v35 = vpop.f32.mrf.mxu0  ;;  %v1454_v59 = vpop.f32.mrf.mxu1 }
 0x1f8   :  { %v1455_v10 = vadd.f32 %v1454_v59, %v1431_v35 }
 0x1fa   :  { %v1474_v58 = vpop.f32.mrf.mxu2  ;;  %v1497_v54 = vpop.f32.mrf.mxu3 }
 0x1fb   :  { %v1475_v62 = vadd.f32 %v1474_v58, %v1452_v51 }
 0x1fd   :  { %v1498_v5 = vadd.f32 %v1497_v54, %v1475_v62 }
 0x202   :  { %v1477_v63 = vpop.f32.mrf.mxu2 }
 0x203   :  { %v1500_v1 = vpop.f32.mrf.mxu3  ;;  %v1478_v15 = vadd.f32 %v1477_v63, %v1455_v10 }
 0x205   :  { %v1501_v27 = vadd.f32 %v1500_v1, %v1478_v15 }
 0x21a   :  { %v1520_v29 = vpop.f32.mrf.mxu0 }
 0x21b   :  { %v1521_v13 = vadd.f32 %v1520_v29, %v1498_v5  ;;  %v1543_v14 = vpop.f32.mrf.mxu1 }
 0x21d   :  { %v1544_v43 = vadd.f32 %v1543_v14, %v1521_v13 }
 0x223   :  { %v1523_v17 = vpop.f32.mrf.mxu0 }
 0x224   :  { %v1524_v32 = vadd.f32 %v1523_v17, %v1501_v27  ;;  %v1546_v34 = vpop.f32.mrf.mxu1 }
 0x226   :  { %v1547_v9 = vadd.f32 %v1546_v34, %v1524_v32 }
 0x228   :  { %v1566_v18 = vpop.f32.mrf.mxu2 }
 0x229   :  { %v1589_v21 = vpop.f32.mrf.mxu3  ;;  %v1567_v48 = vadd.f32 %v1566_v18, %v1544_v43 }
 0x22b   :  { %v1590_v16 = vadd.f32 %v1589_v21, %v1567_v48 }
 0x22d   :  { %v1600_v33 = vmax.f32 %v1598_v49, %v1590_v16 }
 0x22f   :  { %1602 = vrot.lane.b32.xlu0 %v1600_v33, %s1867_s24 }
 0x230   :  { %v1569_v6 = vpop.f32.mrf.mxu2 }
 0x231   :  { %v1570_v31 = vadd.f32 %v1569_v6, %v1547_v9  ;;  %v1592_v37 = vpop.f32.mrf.mxu3 }
 0x233   :  { %v1593_v44 = vadd.f32 %v1592_v37, %v1570_v31 }
 0x235   :  { %v1601_v7 = vmax.f32 %v1599_v41, %v1593_v44 }
 0x237   :  { %1604 = vrot.lane.b32.xlu0 %v1601_v7, %s1867_s24 }
 0x2a1   :  { %v1603_v20 = vpop.permute.xlu0 %1602 }
 0x2a2   :  { %v1606_v19 = vmax.f32 %v1600_v33, %v1603_v20 }
 0x2a4   :  { %1608 = vrot.lane.b32.xlu1 %v1606_v19, %s1873_s10 }
 0x2a9   :  { %v1605_v28 = vpop.permute.xlu0 %1604 }
 0x2aa   :  { %v1607_v40 = vmax.f32 %v1601_v7, %v1605_v28 }
 0x2ac   :  { %1610 = vrot.lane.b32.xlu1 %v1607_v40, %s1873_s10 }
 0x316   :  { %v1609_v38 = vpop.permute.xlu1 %1608 }
 0x317   :  { %v1612_v2 = vmax.f32 %v1606_v19, %v1609_v38 }
 0x319   :  { %v1617_v46 = vadd.f32 %v1736_v45, %v1612_v2 }
 0x31b   :  { %v1619_v39 = vmax.f32 %v1617_v46, 0.0 }
 0x31d   :  { %1621 = vst [vmem:[#allocation10] sm:$0xff] %v1619_v39 }
 0x31e   :  { %v1611_v0 = vpop.permute.xlu1 %1610 }
 0x31f   :  { %v1613_v36 = vmax.f32 %v1607_v40, %v1611_v0 }
 0x321   :  { %v1618_v26 = vadd.f32 %v1736_v45, %v1613_v36 }
 0x323   :  { %v1620_v3 = vmax.f32 %v1618_v26, 0.0 }
 0x325   :  { %1622 = vst [vmem:[#allocation10 + $0x8] sm:$0xff] %v1620_v3 }
 0x326   :  { %1635 = dma.vmem_to_hbm [thread:$0]  %s1628_s3, 256, %s1630_s15, [#allocation4], %s1869_s27, %s1869_s27, %s1870_s28  }
 0x327   :  { %1863 = dma.done.wait [#allocation4], 256  }
 0x328   :  { %1864 = vsyncadd [#allocation4], 4294967040 }
 0x329   :  { %1640 = vsyncpa [#allocation3], 1 }
 0x32a   :  { %1641 = vsyncpa [#allocation6], 1 }
 0x32b   :  { %1642 = vsyncpa [#allocation9], 1 }
 0x32c   :  { %1643 = vsyncpa [#allocation4], 1 }

</bundles_post_ra>
